<compile_context>
chip_gen: v7x
topology: tpu7x:2x2x1
jax: 0.10.0
libtpu: 0.0.40
codegen_flags: <defaults>
</compile_context>

<pallas_src>
import functools

import jax
import jax.numpy as jnp
from jax.experimental import pallas as pl
from jax.experimental.pallas import tpu as pltpu

# ---------------- model hyper-parameters (small, consistent with a ViT) -----
B = 2          # batch
C = 3          # image channels
IMG = 16       # image height/width
P = 8          # patch size
NP = (IMG // P) ** 2          # num patches = 4
SEQ = NP + 1                  # +CLS = 5
D = 32         # hidden size
NH = 2         # attention heads
DH = D // NH   # head dim = 16
MLP = 64       # mlp intermediate
LAYERS = 2     # encoder layers
PROJ = 16      # visual projection dim
CPP = C * P * P               # flattened patch size = 192
LN_EPS = 1e-5


# ---------------------------- fused Pallas kernel ----------------------------
def _clip_fwd_kernel(
    patches_ref,            # (1, NP, CPP)   this batch element's patches
    patch_w_ref,            # (CPP, D)
    cls_ref,                # (1, D)
    pos_ref,                # (SEQ, D)
    pre_g_ref, pre_b_ref,   # (1, D)
    ln1_g_ref, ln1_b_ref,   # (LAYERS, 1, D)
    qkv_w_ref, qkv_b_ref,   # (LAYERS, D, 3D), (LAYERS, 1, 3D)  (scale folded in)
    o_w_ref, o_b_ref,       # (LAYERS, D, D), (LAYERS, 1, D)
    ln2_g_ref, ln2_b_ref,   # (LAYERS, 1, D)
    fc1_w_ref, fc1_b_ref,   # (LAYERS, D, MLP), (LAYERS, 1, MLP)
    fc2_w_ref, fc2_b_ref,   # (LAYERS, MLP, D), (LAYERS, 1, D)
    post_g_ref, post_b_ref, # (1, D)
    proj_w_ref,             # (D, PROJ)
    out_ref,                # (1, 1, PROJ)
):
    def ln(x, g, b):
        mu = jnp.mean(x, axis=-1, keepdims=True)
        xc = x - mu
        var = jnp.mean(xc * xc, axis=-1, keepdims=True)
        return xc * jax.lax.rsqrt(var + LN_EPS) * g + b

    # --- patch embedding (conv stride=P == matmul over flattened patches) ---
    pe = jnp.dot(patches_ref[0], patch_w_ref[...],
                 preferred_element_type=jnp.float32)            # (NP, D)

    # --- assemble tokens: [CLS; patches] + position embeddings (registers) --
    tokens = jnp.concatenate([cls_ref[...], pe], axis=0)        # (SEQ, D)
    h = tokens + pos_ref[...]

    # --- pre layernorm -------------------------------------------------------
    h = ln(h, pre_g_ref[...], pre_b_ref[...])

    # --- transformer encoder (static unroll; weights resident in VMEM) -------
    for l in range(LAYERS):
        # attention block
        resid = h
        hn = ln(h, ln1_g_ref[l], ln1_b_ref[l])
        qkv = (jnp.dot(hn, qkv_w_ref[l], preferred_element_type=jnp.float32)
               + qkv_b_ref[l])                                  # (SEQ, 3D)
        q = qkv[:, 0:D]          # already scaled by DH**-0.5 (folded in weights)
        k = qkv[:, D:2 * D]
        v = qkv[:, 2 * D:3 * D]
        heads = []
        for hd in range(NH):
            sl = slice(hd * DH, (hd + 1) * DH)
            qh, kh, vh = q[:, sl], k[:, sl], v[:, sl]
            s = jax.lax.dot_general(qh, kh, (((1,), (1,)), ((), ())),
                                    preferred_element_type=jnp.float32)  # (SEQ, SEQ)
            s = s - jnp.max(s, axis=-1, keepdims=True)
            p = jnp.exp(s)
            p = p * pl.reciprocal(jnp.sum(p, axis=-1, keepdims=True), approx=True)
            heads.append(jnp.dot(p, vh, preferred_element_type=jnp.float32))
        ctx = jnp.concatenate(heads, axis=-1)                   # (SEQ, D)
        attn = (jnp.dot(ctx, o_w_ref[l], preferred_element_type=jnp.float32)
                + o_b_ref[l])
        h = resid + attn

        # MLP block (quick-GELU epilogue fused after fc1's dot; sigmoid -> EUP)
        resid = h
        hn = ln(h, ln2_g_ref[l], ln2_b_ref[l])
        hf = (jnp.dot(hn, fc1_w_ref[l], preferred_element_type=jnp.float32)
              + fc1_b_ref[l])                                   # (SEQ, MLP)
        hf = hf * jax.nn.sigmoid(1.702 * hf)                    # CLIP quick_gelu
        hf = (jnp.dot(hf, fc2_w_ref[l], preferred_element_type=jnp.float32)
              + fc2_b_ref[l])
        h = resid + hf

    # --- pooler_output = post_layernorm(CLS); visual projection (no bias) ----
    pooled = ln(h[0:1, :], post_g_ref[...], post_b_ref[...])    # (1, D)
    out_ref[0] = jnp.dot(pooled, proj_w_ref[...],
                         preferred_element_type=jnp.float32)    # (1, PROJ)


# ------------------------- parameter initialization --------------------------
def init_params(key):
    keys = iter(jax.random.split(key, 128))

    def nrm(shape, s=0.02):
        return (s * jax.random.normal(next(keys), shape)).astype(jnp.float32)

    params = {
        # conv patch-embed weight (hidden, C, P, P) stored flattened+transposed
        # as (C*P*P, hidden); conv has no bias in CLIP.
        "patch_w": nrm((CPP, D)),
        "class_emb": nrm((D,)),
        "pos_emb": nrm((SEQ, D)),
        "pre_ln_g": jnp.ones((1, D), jnp.float32),
        "pre_ln_b": jnp.zeros((1, D), jnp.float32),
        "post_ln_g": jnp.ones((1, D), jnp.float32),
        "post_ln_b": jnp.zeros((1, D), jnp.float32),
        # visual_projection: Linear(D, PROJ, bias=False), stored (D, PROJ)
        "proj_w": nrm((D, PROJ)),
        "layers": [],
    }
    for _ in range(LAYERS):
        params["layers"].append(
            {
                "ln1_g": jnp.ones((1, D), jnp.float32),
                "ln1_b": jnp.zeros((1, D), jnp.float32),
                "q_w": nrm((D, D)), "q_b": nrm((1, D)),
                "k_w": nrm((D, D)), "k_b": nrm((1, D)),
                "v_w": nrm((D, D)), "v_b": nrm((1, D)),
                "o_w": nrm((D, D)), "o_b": nrm((1, D)),
                "ln2_g": jnp.ones((1, D), jnp.float32),
                "ln2_b": jnp.zeros((1, D), jnp.float32),
                "fc1_w": nrm((D, MLP)), "fc1_b": nrm((1, MLP)),
                "fc2_w": nrm((MLP, D)), "fc2_b": nrm((1, D)),
            }
        )
    return params


def pack_params(params):
    """Stack per-layer weights to (LAYERS, ...), merge QKV and fold the
    dh**-0.5 scale into the Q weight/bias (mathematically exact)."""
    scale = DH ** -0.5
    ls = params["layers"]
    stack = lambda name: jnp.stack([lyr[name] for lyr in ls])
    qkv_w = jnp.stack(
        [jnp.concatenate([lyr["q_w"] * scale, lyr["k_w"], lyr["v_w"]], axis=1)
         for lyr in ls])                                        # (L, D, 3D)
    qkv_b = jnp.stack(
        [jnp.concatenate([lyr["q_b"] * scale, lyr["k_b"], lyr["v_b"]], axis=1)
         for lyr in ls])                                        # (L, 1, 3D)
    return (
        params["patch_w"],
        params["class_emb"].reshape(1, D),
        params["pos_emb"],
        params["pre_ln_g"], params["pre_ln_b"],
        stack("ln1_g"), stack("ln1_b"),
        qkv_w, qkv_b,
        stack("o_w"), stack("o_b"),
        stack("ln2_g"), stack("ln2_b"),
        stack("fc1_w"), stack("fc1_b"),
        stack("fc2_w"), stack("fc2_b"),
        params["post_ln_g"], params["post_ln_b"],
        params["proj_w"],
    )


# ------------------------------ forward pass ---------------------------------
def clip_image_embeddings(pixel_values, params):
    """pixel_values: (B, C, IMG, IMG) NCHW -> image embeddings (B, PROJ)."""
    b, c, hh, ww = pixel_values.shape
    hp, wp = hh // P, ww // P
    np_ = hp * wp
    seq = np_ + 1
    cpp = c * P * P

    # patch extraction (pure layout, done in the wrapper)
    patches = pixel_values.reshape(b, c, hp, P, wp, P)
    patches = patches.transpose(0, 2, 4, 1, 3, 5).reshape(b, np_, cpp)

    flat = pack_params(params)

    c2 = lambda i: (0, 0)
    c3 = lambda i: (0, 0, 0)
    in_specs = [
        pl.BlockSpec((1, np_, cpp), lambda i: (i, 0, 0)),   # patches (per-batch)
        pl.BlockSpec((cpp, D), c2),                         # patch_w
        pl.BlockSpec((1, D), c2),                           # class_emb
        pl.BlockSpec((seq, D), c2),                         # pos_emb
        pl.BlockSpec((1, D), c2),                           # pre_ln_g
        pl.BlockSpec((1, D), c2),                           # pre_ln_b
        pl.BlockSpec((LAYERS, 1, D), c3),                   # ln1_g
        pl.BlockSpec((LAYERS, 1, D), c3),                   # ln1_b
        pl.BlockSpec((LAYERS, D, 3 * D), c3),               # qkv_w
        pl.BlockSpec((LAYERS, 1, 3 * D), c3),               # qkv_b
        pl.BlockSpec((LAYERS, D, D), c3),                   # o_w
        pl.BlockSpec((LAYERS, 1, D), c3),                   # o_b
        pl.BlockSpec((LAYERS, 1, D), c3),                   # ln2_g
        pl.BlockSpec((LAYERS, 1, D), c3),                   # ln2_b
        pl.BlockSpec((LAYERS, D, MLP), c3),                 # fc1_w
        pl.BlockSpec((LAYERS, 1, MLP), c3),                 # fc1_b
        pl.BlockSpec((LAYERS, MLP, D), c3),                 # fc2_w
        pl.BlockSpec((LAYERS, 1, D), c3),                   # fc2_b
        pl.BlockSpec((1, D), c2),                           # post_ln_g
        pl.BlockSpec((1, D), c2),                           # post_ln_b
        pl.BlockSpec((D, PROJ), c2),                        # proj_w
    ]

    out = pl.pallas_call(
        _clip_fwd_kernel,
        out_shape=jax.ShapeDtypeStruct((b, 1, PROJ), jnp.float32),
        grid=(b,),
        in_specs=in_specs,
        out_specs=pl.BlockSpec((1, 1, PROJ), lambda i: (i, 0, 0)),
        compiler_params=pltpu.CompilerParams(
            dimension_semantics=("parallel",)),                 # 2 TCs on v7x
    )(patches, *flat)
    return out.reshape(b, PROJ)


if __name__ == "__main__":
    key = jax.random.PRNGKey(0)
    k_params, k_img = jax.random.split(key)
    params = init_params(k_params)
    images = jax.random.normal(k_img, (B, C, IMG, IMG), dtype=jnp.float32)

    fwd = jax.jit(functools.partial(clip_image_embeddings, params=params))
    out = fwd(images)
    out = jax.block_until_ready(out)

    assert out.shape == (B, PROJ), out.shape
    assert out.dtype == jnp.float32
    assert bool(jnp.all(jnp.isfinite(out)))
    print("KERNEL_OK")
</pallas_src>

<mosaic_0001>
module attributes {stable_mosaic.version = 11 : i64} {
  func.func @_clip_fwd_kernel(%arg0: i32, %arg1: memref<1x4x192xf32, #tpu.memory_space<vmem>>, %arg2: memref<192x32xf32, #tpu.memory_space<vmem>>, %arg3: memref<1x32xf32, #tpu.memory_space<vmem>>, %arg4: memref<5x32xf32, #tpu.memory_space<vmem>>, %arg5: memref<1x32xf32, #tpu.memory_space<vmem>>, %arg6: memref<1x32xf32, #tpu.memory_space<vmem>>, %arg7: memref<2x1x32xf32, #tpu.memory_space<vmem>>, %arg8: memref<2x1x32xf32, #tpu.memory_space<vmem>>, %arg9: memref<2x32x96xf32, #tpu.memory_space<vmem>>, %arg10: memref<2x1x96xf32, #tpu.memory_space<vmem>>, %arg11: memref<2x32x32xf32, #tpu.memory_space<vmem>>, %arg12: memref<2x1x32xf32, #tpu.memory_space<vmem>>, %arg13: memref<2x1x32xf32, #tpu.memory_space<vmem>>, %arg14: memref<2x1x32xf32, #tpu.memory_space<vmem>>, %arg15: memref<2x32x64xf32, #tpu.memory_space<vmem>>, %arg16: memref<2x1x64xf32, #tpu.memory_space<vmem>>, %arg17: memref<2x64x32xf32, #tpu.memory_space<vmem>>, %arg18: memref<2x1x32xf32, #tpu.memory_space<vmem>>, %arg19: memref<1x32xf32, #tpu.memory_space<vmem>>, %arg20: memref<1x32xf32, #tpu.memory_space<vmem>>, %arg21: memref<32x16xf32, #tpu.memory_space<vmem>>, %arg22: memref<1x1x16xf32, #tpu.memory_space<vmem>>) attributes {dimension_semantics = [#tpu.dimension_semantics<parallel>], iteration_bounds = array<i64: 2>, scalar_prefetch = 0 : i64, scratch_operands = 0 : i64, tpu.core_type = #tpu.core_type<tc>, window_params = [{transform_indices = @transform_0, window_bounds = array<i64: 1, 4, 192>}, {pipeline_mode = #tpu.pipeline_mode<synchronous>, transform_indices = @transform_1, window_bounds = array<i64: 192, 32>}, {pipeline_mode = #tpu.pipeline_mode<synchronous>, transform_indices = @transform_2, window_bounds = array<i64: 1, 32>}, {pipeline_mode = #tpu.pipeline_mode<synchronous>, transform_indices = @transform_3, window_bounds = array<i64: 5, 32>}, {pipeline_mode = #tpu.pipeline_mode<synchronous>, transform_indices = @transform_4, window_bounds = array<i64: 1, 32>}, {pipeline_mode = #tpu.pipeline_mode<synchronous>, transform_indices = @transform_5, window_bounds = array<i64: 1, 32>}, {pipeline_mode = #tpu.pipeline_mode<synchronous>, transform_indices = @transform_6, window_bounds = array<i64: 2, 1, 32>}, {pipeline_mode = #tpu.pipeline_mode<synchronous>, transform_indices = @transform_7, window_bounds = array<i64: 2, 1, 32>}, {pipeline_mode = #tpu.pipeline_mode<synchronous>, transform_indices = @transform_8, window_bounds = array<i64: 2, 32, 96>}, {pipeline_mode = #tpu.pipeline_mode<synchronous>, transform_indices = @transform_9, window_bounds = array<i64: 2, 1, 96>}, {pipeline_mode = #tpu.pipeline_mode<synchronous>, transform_indices = @transform_10, window_bounds = array<i64: 2, 32, 32>}, {pipeline_mode = #tpu.pipeline_mode<synchronous>, transform_indices = @transform_11, window_bounds = array<i64: 2, 1, 32>}, {pipeline_mode = #tpu.pipeline_mode<synchronous>, transform_indices = @transform_12, window_bounds = array<i64: 2, 1, 32>}, {pipeline_mode = #tpu.pipeline_mode<synchronous>, transform_indices = @transform_13, window_bounds = array<i64: 2, 1, 32>}, {pipeline_mode = #tpu.pipeline_mode<synchronous>, transform_indices = @transform_14, window_bounds = array<i64: 2, 32, 64>}, {pipeline_mode = #tpu.pipeline_mode<synchronous>, transform_indices = @transform_15, window_bounds = array<i64: 2, 1, 64>}, {pipeline_mode = #tpu.pipeline_mode<synchronous>, transform_indices = @transform_16, window_bounds = array<i64: 2, 64, 32>}, {pipeline_mode = #tpu.pipeline_mode<synchronous>, transform_indices = @transform_17, window_bounds = array<i64: 2, 1, 32>}, {pipeline_mode = #tpu.pipeline_mode<synchronous>, transform_indices = @transform_18, window_bounds = array<i64: 1, 32>}, {pipeline_mode = #tpu.pipeline_mode<synchronous>, transform_indices = @transform_19, window_bounds = array<i64: 1, 32>}, {pipeline_mode = #tpu.pipeline_mode<synchronous>, transform_indices = @transform_20, window_bounds = array<i64: 32, 16>}, {transform_indices = @transform_21, window_bounds = array<i64: 1, 1, 16>}]} {
    %c0 = arith.constant 0 : index
    %c0_0 = arith.constant 0 : index
    %c0_1 = arith.constant 0 : index
    %0 = vector.load %arg1[%c0, %c0_0, %c0_1] : memref<1x4x192xf32, #tpu.memory_space<vmem>>, vector<1x4x192xf32>
    %1 = vector.shape_cast %0 : vector<1x4x192xf32> to vector<4x192xf32>
    %c0_2 = arith.constant 0 : index
    %c0_3 = arith.constant 0 : index
    %2 = vector.load %arg2[%c0_2, %c0_3] : memref<192x32xf32, #tpu.memory_space<vmem>>, vector<192x32xf32>
    %cst = arith.constant dense<0.000000e+00> : vector<4x32xf32>
    %3 = tpu.matmul %1, %2, %cst {dimension_numbers = #tpu.dot_dimension_numbers<[1], [0], [0], [1], [0, 0, 1, 1], [], []>} : vector<4x192xf32>, vector<192x32xf32>, vector<4x32xf32> -> vector<4x32xf32>
    %c0_4 = arith.constant 0 : index
    %c0_5 = arith.constant 0 : index
    %4 = vector.load %arg3[%c0_4, %c0_5] : memref<1x32xf32, #tpu.memory_space<vmem>>, vector<1x32xf32>
    %5 = tpu.concatenate %4, %3 in 0 : vector<1x32xf32>, vector<4x32xf32> -> vector<5x32xf32>
    %c0_6 = arith.constant 0 : index
    %c0_7 = arith.constant 0 : index
    %6 = vector.load %arg4[%c0_6, %c0_7] : memref<5x32xf32, #tpu.memory_space<vmem>>, vector<5x32xf32>
    %7 = arith.addf %5, %6 : vector<5x32xf32>
    %c0_8 = arith.constant 0 : index
    %c0_9 = arith.constant 0 : index
    %8 = vector.load %arg5[%c0_8, %c0_9] : memref<1x32xf32, #tpu.memory_space<vmem>>, vector<1x32xf32>
    %c0_10 = arith.constant 0 : index
    %c0_11 = arith.constant 0 : index
    %9 = vector.load %arg6[%c0_10, %c0_11] : memref<1x32xf32, #tpu.memory_space<vmem>>, vector<1x32xf32>
    %cst_12 = arith.constant dense<0.000000e+00> : vector<5xf32>
    %10 = vector.multi_reduction <add>, %7, %cst_12 [1] : vector<5x32xf32> to vector<5xf32>
    %11 = vector.shape_cast %10 : vector<5xf32> to vector<5x1xf32>
    %cst_13 = arith.constant 3.200000e+01 : f32
    %12 = vector.broadcast %cst_13 : f32 to vector<5x1xf32>
    %13 = arith.divf %11, %12 : vector<5x1xf32>
    %14 = vector.broadcast %13 : vector<5x1xf32> to vector<5x32xf32>
    %15 = arith.subf %7, %14 : vector<5x32xf32>
    %16 = arith.mulf %15, %15 : vector<5x32xf32>
    %cst_14 = arith.constant dense<0.000000e+00> : vector<5xf32>
    %17 = vector.multi_reduction <add>, %16, %cst_14 [1] : vector<5x32xf32> to vector<5xf32>
    %18 = vector.shape_cast %17 : vector<5xf32> to vector<5x1xf32>
    %cst_15 = arith.constant 3.200000e+01 : f32
    %19 = vector.broadcast %cst_15 : f32 to vector<5x1xf32>
    %20 = arith.divf %18, %19 : vector<5x1xf32>
    %cst_16 = arith.constant 9.99999974E-6 : f32
    %21 = vector.broadcast %cst_16 : f32 to vector<5x1xf32>
    %22 = arith.addf %20, %21 : vector<5x1xf32>
    %23 = math.rsqrt %22 : vector<5x1xf32>
    %24 = vector.broadcast %23 : vector<5x1xf32> to vector<5x32xf32>
    %25 = arith.mulf %15, %24 : vector<5x32xf32>
    %26 = vector.broadcast %8 : vector<1x32xf32> to vector<5x32xf32>
    %27 = arith.mulf %25, %26 : vector<5x32xf32>
    %28 = vector.broadcast %9 : vector<1x32xf32> to vector<5x32xf32>
    %29 = arith.addf %27, %28 : vector<5x32xf32>
    %c0_17 = arith.constant 0 : index
    %c0_18 = arith.constant 0 : index
    %c0_19 = arith.constant 0 : index
    %30 = vector.load %arg7[%c0_17, %c0_18, %c0_19] : memref<2x1x32xf32, #tpu.memory_space<vmem>>, vector<1x1x32xf32>
    %31 = vector.shape_cast %30 : vector<1x1x32xf32> to vector<1x32xf32>
    %c0_20 = arith.constant 0 : index
    %c0_21 = arith.constant 0 : index
    %c0_22 = arith.constant 0 : index
    %32 = vector.load %arg8[%c0_20, %c0_21, %c0_22] : memref<2x1x32xf32, #tpu.memory_space<vmem>>, vector<1x1x32xf32>
    %33 = vector.shape_cast %32 : vector<1x1x32xf32> to vector<1x32xf32>
    %cst_23 = arith.constant dense<0.000000e+00> : vector<5xf32>
    %34 = vector.multi_reduction <add>, %29, %cst_23 [1] : vector<5x32xf32> to vector<5xf32>
    %35 = vector.shape_cast %34 : vector<5xf32> to vector<5x1xf32>
    %cst_24 = arith.constant 3.200000e+01 : f32
    %36 = vector.broadcast %cst_24 : f32 to vector<5x1xf32>
    %37 = arith.divf %35, %36 : vector<5x1xf32>
    %38 = vector.broadcast %37 : vector<5x1xf32> to vector<5x32xf32>
    %39 = arith.subf %29, %38 : vector<5x32xf32>
    %40 = arith.mulf %39, %39 : vector<5x32xf32>
    %cst_25 = arith.constant dense<0.000000e+00> : vector<5xf32>
    %41 = vector.multi_reduction <add>, %40, %cst_25 [1] : vector<5x32xf32> to vector<5xf32>
    %42 = vector.shape_cast %41 : vector<5xf32> to vector<5x1xf32>
    %cst_26 = arith.constant 3.200000e+01 : f32
    %43 = vector.broadcast %cst_26 : f32 to vector<5x1xf32>
    %44 = arith.divf %42, %43 : vector<5x1xf32>
    %cst_27 = arith.constant 9.99999974E-6 : f32
    %45 = vector.broadcast %cst_27 : f32 to vector<5x1xf32>
    %46 = arith.addf %44, %45 : vector<5x1xf32>
    %47 = math.rsqrt %46 : vector<5x1xf32>
    %48 = vector.broadcast %47 : vector<5x1xf32> to vector<5x32xf32>
    %49 = arith.mulf %39, %48 : vector<5x32xf32>
    %50 = vector.broadcast %31 : vector<1x32xf32> to vector<5x32xf32>
    %51 = arith.mulf %49, %50 : vector<5x32xf32>
    %52 = vector.broadcast %33 : vector<1x32xf32> to vector<5x32xf32>
    %53 = arith.addf %51, %52 : vector<5x32xf32>
    %c0_28 = arith.constant 0 : index
    %c0_29 = arith.constant 0 : index
    %c0_30 = arith.constant 0 : index
    %54 = vector.load %arg9[%c0_28, %c0_29, %c0_30] : memref<2x32x96xf32, #tpu.memory_space<vmem>>, vector<1x32x96xf32>
    %55 = vector.shape_cast %54 : vector<1x32x96xf32> to vector<32x96xf32>
    %cst_31 = arith.constant dense<0.000000e+00> : vector<5x96xf32>
    %56 = tpu.matmul %53, %55, %cst_31 {dimension_numbers = #tpu.dot_dimension_numbers<[1], [0], [0], [1], [0, 0, 1, 1], [], []>} : vector<5x32xf32>, vector<32x96xf32>, vector<5x96xf32> -> vector<5x96xf32>
    %c0_32 = arith.constant 0 : index
    %c0_33 = arith.constant 0 : index
    %c0_34 = arith.constant 0 : index
    %57 = vector.load %arg10[%c0_32, %c0_33, %c0_34] : memref<2x1x96xf32, #tpu.memory_space<vmem>>, vector<1x1x96xf32>
    %58 = vector.shape_cast %57 : vector<1x1x96xf32> to vector<1x96xf32>
    %59 = vector.broadcast %58 : vector<1x96xf32> to vector<5x96xf32>
    %60 = arith.addf %56, %59 : vector<5x96xf32>
    %61 = vector.extract_strided_slice %60 {offsets = [0, 0], sizes = [5, 32], strides = [1, 1]} : vector<5x96xf32> to vector<5x32xf32>
    %62 = vector.extract_strided_slice %60 {offsets = [0, 32], sizes = [5, 32], strides = [1, 1]} : vector<5x96xf32> to vector<5x32xf32>
    %63 = vector.extract_strided_slice %60 {offsets = [0, 64], sizes = [5, 32], strides = [1, 1]} : vector<5x96xf32> to vector<5x32xf32>
    %64 = vector.extract_strided_slice %61 {offsets = [0, 0], sizes = [5, 16], strides = [1, 1]} : vector<5x32xf32> to vector<5x16xf32>
    %65 = vector.extract_strided_slice %62 {offsets = [0, 0], sizes = [5, 16], strides = [1, 1]} : vector<5x32xf32> to vector<5x16xf32>
    %66 = vector.extract_strided_slice %63 {offsets = [0, 0], sizes = [5, 16], strides = [1, 1]} : vector<5x32xf32> to vector<5x16xf32>
    %cst_35 = arith.constant dense<0.000000e+00> : vector<5x5xf32>
    %67 = tpu.matmul %64, %65, %cst_35 {dimension_numbers = #tpu.dot_dimension_numbers<[1], [1], [0], [0], [0, 0, 1, 0], [], []>} : vector<5x16xf32>, vector<5x16xf32>, vector<5x5xf32> -> vector<5x5xf32>
    %cst_36 = arith.constant dense<0xFF800000> : vector<5xf32>
    %68 = vector.multi_reduction <maximumf>, %67, %cst_36 [1] : vector<5x5xf32> to vector<5xf32>
    %69 = vector.shape_cast %68 : vector<5xf32> to vector<5x1xf32>
    %70 = vector.broadcast %69 : vector<5x1xf32> to vector<5x5xf32>
    %71 = arith.subf %67, %70 : vector<5x5xf32>
    %72 = math.exp %71 : vector<5x5xf32>
    %cst_37 = arith.constant dense<0.000000e+00> : vector<5xf32>
    %73 = vector.multi_reduction <add>, %72, %cst_37 [1] : vector<5x5xf32> to vector<5xf32>
    %74 = vector.shape_cast %73 : vector<5xf32> to vector<5x1xf32>
    %75 = tpu.reciprocal %74 {approx = true} : vector<5x1xf32> -> vector<5x1xf32>
    %76 = vector.broadcast %75 : vector<5x1xf32> to vector<5x5xf32>
    %77 = arith.mulf %72, %76 : vector<5x5xf32>
    %cst_38 = arith.constant dense<0.000000e+00> : vector<5x16xf32>
    %78 = tpu.matmul %77, %66, %cst_38 {dimension_numbers = #tpu.dot_dimension_numbers<[1], [0], [0], [1], [0, 0, 1, 1], [], []>} : vector<5x5xf32>, vector<5x16xf32>, vector<5x16xf32> -> vector<5x16xf32>
    %79 = vector.extract_strided_slice %61 {offsets = [0, 16], sizes = [5, 16], strides = [1, 1]} : vector<5x32xf32> to vector<5x16xf32>
    %80 = vector.extract_strided_slice %62 {offsets = [0, 16], sizes = [5, 16], strides = [1, 1]} : vector<5x32xf32> to vector<5x16xf32>
    %81 = vector.extract_strided_slice %63 {offsets = [0, 16], sizes = [5, 16], strides = [1, 1]} : vector<5x32xf32> to vector<5x16xf32>
    %cst_39 = arith.constant dense<0.000000e+00> : vector<5x5xf32>
    %82 = tpu.matmul %79, %80, %cst_39 {dimension_numbers = #tpu.dot_dimension_numbers<[1], [1], [0], [0], [0, 0, 1, 0], [], []>} : vector<5x16xf32>, vector<5x16xf32>, vector<5x5xf32> -> vector<5x5xf32>
    %cst_40 = arith.constant dense<0xFF800000> : vector<5xf32>
    %83 = vector.multi_reduction <maximumf>, %82, %cst_40 [1] : vector<5x5xf32> to vector<5xf32>
    %84 = vector.shape_cast %83 : vector<5xf32> to vector<5x1xf32>
    %85 = vector.broadcast %84 : vector<5x1xf32> to vector<5x5xf32>
    %86 = arith.subf %82, %85 : vector<5x5xf32>
    %87 = math.exp %86 : vector<5x5xf32>
    %cst_41 = arith.constant dense<0.000000e+00> : vector<5xf32>
    %88 = vector.multi_reduction <add>, %87, %cst_41 [1] : vector<5x5xf32> to vector<5xf32>
    %89 = vector.shape_cast %88 : vector<5xf32> to vector<5x1xf32>
    %90 = tpu.reciprocal %89 {approx = true} : vector<5x1xf32> -> vector<5x1xf32>
    %91 = vector.broadcast %90 : vector<5x1xf32> to vector<5x5xf32>
    %92 = arith.mulf %87, %91 : vector<5x5xf32>
    %cst_42 = arith.constant dense<0.000000e+00> : vector<5x16xf32>
    %93 = tpu.matmul %92, %81, %cst_42 {dimension_numbers = #tpu.dot_dimension_numbers<[1], [0], [0], [1], [0, 0, 1, 1], [], []>} : vector<5x5xf32>, vector<5x16xf32>, vector<5x16xf32> -> vector<5x16xf32>
    %94 = tpu.concatenate %78, %93 in 1 : vector<5x16xf32>, vector<5x16xf32> -> vector<5x32xf32>
    %c0_43 = arith.constant 0 : index
    %c0_44 = arith.constant 0 : index
    %c0_45 = arith.constant 0 : index
    %95 = vector.load %arg11[%c0_43, %c0_44, %c0_45] : memref<2x32x32xf32, #tpu.memory_space<vmem>>, vector<1x32x32xf32>
    %96 = vector.shape_cast %95 : vector<1x32x32xf32> to vector<32x32xf32>
    %cst_46 = arith.constant dense<0.000000e+00> : vector<5x32xf32>
    %97 = tpu.matmul %94, %96, %cst_46 {dimension_numbers = #tpu.dot_dimension_numbers<[1], [0], [0], [1], [0, 0, 1, 1], [], []>} : vector<5x32xf32>, vector<32x32xf32>, vector<5x32xf32> -> vector<5x32xf32>
    %c0_47 = arith.constant 0 : index
    %c0_48 = arith.constant 0 : index
    %c0_49 = arith.constant 0 : index
    %98 = vector.load %arg12[%c0_47, %c0_48, %c0_49] : memref<2x1x32xf32, #tpu.memory_space<vmem>>, vector<1x1x32xf32>
    %99 = vector.shape_cast %98 : vector<1x1x32xf32> to vector<1x32xf32>
    %100 = vector.broadcast %99 : vector<1x32xf32> to vector<5x32xf32>
    %101 = arith.addf %97, %100 : vector<5x32xf32>
    %102 = arith.addf %29, %101 : vector<5x32xf32>
    %c0_50 = arith.constant 0 : index
    %c0_51 = arith.constant 0 : index
    %c0_52 = arith.constant 0 : index
    %103 = vector.load %arg13[%c0_50, %c0_51, %c0_52] : memref<2x1x32xf32, #tpu.memory_space<vmem>>, vector<1x1x32xf32>
    %104 = vector.shape_cast %103 : vector<1x1x32xf32> to vector<1x32xf32>
    %c0_53 = arith.constant 0 : index
    %c0_54 = arith.constant 0 : index
    %c0_55 = arith.constant 0 : index
    %105 = vector.load %arg14[%c0_53, %c0_54, %c0_55] : memref<2x1x32xf32, #tpu.memory_space<vmem>>, vector<1x1x32xf32>
    %106 = vector.shape_cast %105 : vector<1x1x32xf32> to vector<1x32xf32>
    %cst_56 = arith.constant dense<0.000000e+00> : vector<5xf32>
    %107 = vector.multi_reduction <add>, %102, %cst_56 [1] : vector<5x32xf32> to vector<5xf32>
    %108 = vector.shape_cast %107 : vector<5xf32> to vector<5x1xf32>
    %cst_57 = arith.constant 3.200000e+01 : f32
    %109 = vector.broadcast %cst_57 : f32 to vector<5x1xf32>
    %110 = arith.divf %108, %109 : vector<5x1xf32>
    %111 = vector.broadcast %110 : vector<5x1xf32> to vector<5x32xf32>
    %112 = arith.subf %102, %111 : vector<5x32xf32>
    %113 = arith.mulf %112, %112 : vector<5x32xf32>
    %cst_58 = arith.constant dense<0.000000e+00> : vector<5xf32>
    %114 = vector.multi_reduction <add>, %113, %cst_58 [1] : vector<5x32xf32> to vector<5xf32>
    %115 = vector.shape_cast %114 : vector<5xf32> to vector<5x1xf32>
    %cst_59 = arith.constant 3.200000e+01 : f32
    %116 = vector.broadcast %cst_59 : f32 to vector<5x1xf32>
    %117 = arith.divf %115, %116 : vector<5x1xf32>
    %cst_60 = arith.constant 9.99999974E-6 : f32
    %118 = vector.broadcast %cst_60 : f32 to vector<5x1xf32>
    %119 = arith.addf %117, %118 : vector<5x1xf32>
    %120 = math.rsqrt %119 : vector<5x1xf32>
    %121 = vector.broadcast %120 : vector<5x1xf32> to vector<5x32xf32>
    %122 = arith.mulf %112, %121 : vector<5x32xf32>
    %123 = vector.broadcast %104 : vector<1x32xf32> to vector<5x32xf32>
    %124 = arith.mulf %122, %123 : vector<5x32xf32>
    %125 = vector.broadcast %106 : vector<1x32xf32> to vector<5x32xf32>
    %126 = arith.addf %124, %125 : vector<5x32xf32>
    %c0_61 = arith.constant 0 : index
    %c0_62 = arith.constant 0 : index
    %c0_63 = arith.constant 0 : index
    %127 = vector.load %arg15[%c0_61, %c0_62, %c0_63] : memref<2x32x64xf32, #tpu.memory_space<vmem>>, vector<1x32x64xf32>
    %128 = vector.shape_cast %127 : vector<1x32x64xf32> to vector<32x64xf32>
    %cst_64 = arith.constant dense<0.000000e+00> : vector<5x64xf32>
    %129 = tpu.matmul %126, %128, %cst_64 {dimension_numbers = #tpu.dot_dimension_numbers<[1], [0], [0], [1], [0, 0, 1, 1], [], []>} : vector<5x32xf32>, vector<32x64xf32>, vector<5x64xf32> -> vector<5x64xf32>
    %c0_65 = arith.constant 0 : index
    %c0_66 = arith.constant 0 : index
    %c0_67 = arith.constant 0 : index
    %130 = vector.load %arg16[%c0_65, %c0_66, %c0_67] : memref<2x1x64xf32, #tpu.memory_space<vmem>>, vector<1x1x64xf32>
    %131 = vector.shape_cast %130 : vector<1x1x64xf32> to vector<1x64xf32>
    %132 = vector.broadcast %131 : vector<1x64xf32> to vector<5x64xf32>
    %133 = arith.addf %129, %132 : vector<5x64xf32>
    %cst_68 = arith.constant 1.702000e+00 : f32
    %134 = vector.broadcast %cst_68 : f32 to vector<5x64xf32>
    %135 = arith.mulf %134, %133 : vector<5x64xf32>
    %136 = arith.negf %135 : vector<5x64xf32>
    %137 = math.exp %136 : vector<5x64xf32>
    %cst_69 = arith.constant 1.000000e+00 : f32
    %138 = vector.broadcast %cst_69 : f32 to vector<5x64xf32>
    %139 = arith.addf %138, %137 : vector<5x64xf32>
    %140 = arith.divf %138, %139 : vector<5x64xf32>
    %141 = arith.mulf %133, %140 : vector<5x64xf32>
    %c0_70 = arith.constant 0 : index
    %c0_71 = arith.constant 0 : index
    %c0_72 = arith.constant 0 : index
    %142 = vector.load %arg17[%c0_70, %c0_71, %c0_72] : memref<2x64x32xf32, #tpu.memory_space<vmem>>, vector<1x64x32xf32>
    %143 = vector.shape_cast %142 : vector<1x64x32xf32> to vector<64x32xf32>
    %cst_73 = arith.constant dense<0.000000e+00> : vector<5x32xf32>
    %144 = tpu.matmul %141, %143, %cst_73 {dimension_numbers = #tpu.dot_dimension_numbers<[1], [0], [0], [1], [0, 0, 1, 1], [], []>} : vector<5x64xf32>, vector<64x32xf32>, vector<5x32xf32> -> vector<5x32xf32>
    %c0_74 = arith.constant 0 : index
    %c0_75 = arith.constant 0 : index
    %c0_76 = arith.constant 0 : index
    %145 = vector.load %arg18[%c0_74, %c0_75, %c0_76] : memref<2x1x32xf32, #tpu.memory_space<vmem>>, vector<1x1x32xf32>
    %146 = vector.shape_cast %145 : vector<1x1x32xf32> to vector<1x32xf32>
    %147 = vector.broadcast %146 : vector<1x32xf32> to vector<5x32xf32>
    %148 = arith.addf %144, %147 : vector<5x32xf32>
    %149 = arith.addf %102, %148 : vector<5x32xf32>
    %c1 = arith.constant 1 : index
    %c0_77 = arith.constant 0 : index
    %c0_78 = arith.constant 0 : index
    %150 = vector.load %arg7[%c1, %c0_77, %c0_78] : memref<2x1x32xf32, #tpu.memory_space<vmem>>, vector<1x1x32xf32>
    %151 = vector.shape_cast %150 : vector<1x1x32xf32> to vector<1x32xf32>
    %c1_79 = arith.constant 1 : index
    %c0_80 = arith.constant 0 : index
    %c0_81 = arith.constant 0 : index
    %152 = vector.load %arg8[%c1_79, %c0_80, %c0_81] : memref<2x1x32xf32, #tpu.memory_space<vmem>>, vector<1x1x32xf32>
    %153 = vector.shape_cast %152 : vector<1x1x32xf32> to vector<1x32xf32>
    %cst_82 = arith.constant dense<0.000000e+00> : vector<5xf32>
    %154 = vector.multi_reduction <add>, %149, %cst_82 [1] : vector<5x32xf32> to vector<5xf32>
    %155 = vector.shape_cast %154 : vector<5xf32> to vector<5x1xf32>
    %cst_83 = arith.constant 3.200000e+01 : f32
    %156 = vector.broadcast %cst_83 : f32 to vector<5x1xf32>
    %157 = arith.divf %155, %156 : vector<5x1xf32>
    %158 = vector.broadcast %157 : vector<5x1xf32> to vector<5x32xf32>
    %159 = arith.subf %149, %158 : vector<5x32xf32>
    %160 = arith.mulf %159, %159 : vector<5x32xf32>
    %cst_84 = arith.constant dense<0.000000e+00> : vector<5xf32>
    %161 = vector.multi_reduction <add>, %160, %cst_84 [1] : vector<5x32xf32> to vector<5xf32>
    %162 = vector.shape_cast %161 : vector<5xf32> to vector<5x1xf32>
    %cst_85 = arith.constant 3.200000e+01 : f32
    %163 = vector.broadcast %cst_85 : f32 to vector<5x1xf32>
    %164 = arith.divf %162, %163 : vector<5x1xf32>
    %cst_86 = arith.constant 9.99999974E-6 : f32
    %165 = vector.broadcast %cst_86 : f32 to vector<5x1xf32>
    %166 = arith.addf %164, %165 : vector<5x1xf32>
    %167 = math.rsqrt %166 : vector<5x1xf32>
    %168 = vector.broadcast %167 : vector<5x1xf32> to vector<5x32xf32>
    %169 = arith.mulf %159, %168 : vector<5x32xf32>
    %170 = vector.broadcast %151 : vector<1x32xf32> to vector<5x32xf32>
    %171 = arith.mulf %169, %170 : vector<5x32xf32>
    %172 = vector.broadcast %153 : vector<1x32xf32> to vector<5x32xf32>
    %173 = arith.addf %171, %172 : vector<5x32xf32>
    %c1_87 = arith.constant 1 : index
    %c0_88 = arith.constant 0 : index
    %c0_89 = arith.constant 0 : index
    %174 = vector.load %arg9[%c1_87, %c0_88, %c0_89] : memref<2x32x96xf32, #tpu.memory_space<vmem>>, vector<1x32x96xf32>
    %175 = vector.shape_cast %174 : vector<1x32x96xf32> to vector<32x96xf32>
    %cst_90 = arith.constant dense<0.000000e+00> : vector<5x96xf32>
    %176 = tpu.matmul %173, %175, %cst_90 {dimension_numbers = #tpu.dot_dimension_numbers<[1], [0], [0], [1], [0, 0, 1, 1], [], []>} : vector<5x32xf32>, vector<32x96xf32>, vector<5x96xf32> -> vector<5x96xf32>
    %c1_91 = arith.constant 1 : index
    %c0_92 = arith.constant 0 : index
    %c0_93 = arith.constant 0 : index
    %177 = vector.load %arg10[%c1_91, %c0_92, %c0_93] : memref<2x1x96xf32, #tpu.memory_space<vmem>>, vector<1x1x96xf32>
    %178 = vector.shape_cast %177 : vector<1x1x96xf32> to vector<1x96xf32>
    %179 = vector.broadcast %178 : vector<1x96xf32> to vector<5x96xf32>
    %180 = arith.addf %176, %179 : vector<5x96xf32>
    %181 = vector.extract_strided_slice %180 {offsets = [0, 0], sizes = [5, 32], strides = [1, 1]} : vector<5x96xf32> to vector<5x32xf32>
    %182 = vector.extract_strided_slice %180 {offsets = [0, 32], sizes = [5, 32], strides = [1, 1]} : vector<5x96xf32> to vector<5x32xf32>
    %183 = vector.extract_strided_slice %180 {offsets = [0, 64], sizes = [5, 32], strides = [1, 1]} : vector<5x96xf32> to vector<5x32xf32>
    %184 = vector.extract_strided_slice %181 {offsets = [0, 0], sizes = [5, 16], strides = [1, 1]} : vector<5x32xf32> to vector<5x16xf32>
    %185 = vector.extract_strided_slice %182 {offsets = [0, 0], sizes = [5, 16], strides = [1, 1]} : vector<5x32xf32> to vector<5x16xf32>
    %186 = vector.extract_strided_slice %183 {offsets = [0, 0], sizes = [5, 16], strides = [1, 1]} : vector<5x32xf32> to vector<5x16xf32>
    %cst_94 = arith.constant dense<0.000000e+00> : vector<5x5xf32>
    %187 = tpu.matmul %184, %185, %cst_94 {dimension_numbers = #tpu.dot_dimension_numbers<[1], [1], [0], [0], [0, 0, 1, 0], [], []>} : vector<5x16xf32>, vector<5x16xf32>, vector<5x5xf32> -> vector<5x5xf32>
    %cst_95 = arith.constant dense<0xFF800000> : vector<5xf32>
    %188 = vector.multi_reduction <maximumf>, %187, %cst_95 [1] : vector<5x5xf32> to vector<5xf32>
    %189 = vector.shape_cast %188 : vector<5xf32> to vector<5x1xf32>
    %190 = vector.broadcast %189 : vector<5x1xf32> to vector<5x5xf32>
    %191 = arith.subf %187, %190 : vector<5x5xf32>
    %192 = math.exp %191 : vector<5x5xf32>
    %cst_96 = arith.constant dense<0.000000e+00> : vector<5xf32>
    %193 = vector.multi_reduction <add>, %192, %cst_96 [1] : vector<5x5xf32> to vector<5xf32>
    %194 = vector.shape_cast %193 : vector<5xf32> to vector<5x1xf32>
    %195 = tpu.reciprocal %194 {approx = true} : vector<5x1xf32> -> vector<5x1xf32>
    %196 = vector.broadcast %195 : vector<5x1xf32> to vector<5x5xf32>
    %197 = arith.mulf %192, %196 : vector<5x5xf32>
    %cst_97 = arith.constant dense<0.000000e+00> : vector<5x16xf32>
    %198 = tpu.matmul %197, %186, %cst_97 {dimension_numbers = #tpu.dot_dimension_numbers<[1], [0], [0], [1], [0, 0, 1, 1], [], []>} : vector<5x5xf32>, vector<5x16xf32>, vector<5x16xf32> -> vector<5x16xf32>
    %199 = vector.extract_strided_slice %181 {offsets = [0, 16], sizes = [5, 16], strides = [1, 1]} : vector<5x32xf32> to vector<5x16xf32>
    %200 = vector.extract_strided_slice %182 {offsets = [0, 16], sizes = [5, 16], strides = [1, 1]} : vector<5x32xf32> to vector<5x16xf32>
    %201 = vector.extract_strided_slice %183 {offsets = [0, 16], sizes = [5, 16], strides = [1, 1]} : vector<5x32xf32> to vector<5x16xf32>
    %cst_98 = arith.constant dense<0.000000e+00> : vector<5x5xf32>
    %202 = tpu.matmul %199, %200, %cst_98 {dimension_numbers = #tpu.dot_dimension_numbers<[1], [1], [0], [0], [0, 0, 1, 0], [], []>} : vector<5x16xf32>, vector<5x16xf32>, vector<5x5xf32> -> vector<5x5xf32>
    %cst_99 = arith.constant dense<0xFF800000> : vector<5xf32>
    %203 = vector.multi_reduction <maximumf>, %202, %cst_99 [1] : vector<5x5xf32> to vector<5xf32>
    %204 = vector.shape_cast %203 : vector<5xf32> to vector<5x1xf32>
    %205 = vector.broadcast %204 : vector<5x1xf32> to vector<5x5xf32>
    %206 = arith.subf %202, %205 : vector<5x5xf32>
    %207 = math.exp %206 : vector<5x5xf32>
    %cst_100 = arith.constant dense<0.000000e+00> : vector<5xf32>
    %208 = vector.multi_reduction <add>, %207, %cst_100 [1] : vector<5x5xf32> to vector<5xf32>
    %209 = vector.shape_cast %208 : vector<5xf32> to vector<5x1xf32>
    %210 = tpu.reciprocal %209 {approx = true} : vector<5x1xf32> -> vector<5x1xf32>
    %211 = vector.broadcast %210 : vector<5x1xf32> to vector<5x5xf32>
    %212 = arith.mulf %207, %211 : vector<5x5xf32>
    %cst_101 = arith.constant dense<0.000000e+00> : vector<5x16xf32>
    %213 = tpu.matmul %212, %201, %cst_101 {dimension_numbers = #tpu.dot_dimension_numbers<[1], [0], [0], [1], [0, 0, 1, 1], [], []>} : vector<5x5xf32>, vector<5x16xf32>, vector<5x16xf32> -> vector<5x16xf32>
    %214 = tpu.concatenate %198, %213 in 1 : vector<5x16xf32>, vector<5x16xf32> -> vector<5x32xf32>
    %c1_102 = arith.constant 1 : index
    %c0_103 = arith.constant 0 : index
    %c0_104 = arith.constant 0 : index
    %215 = vector.load %arg11[%c1_102, %c0_103, %c0_104] : memref<2x32x32xf32, #tpu.memory_space<vmem>>, vector<1x32x32xf32>
    %216 = vector.shape_cast %215 : vector<1x32x32xf32> to vector<32x32xf32>
    %cst_105 = arith.constant dense<0.000000e+00> : vector<5x32xf32>
    %217 = tpu.matmul %214, %216, %cst_105 {dimension_numbers = #tpu.dot_dimension_numbers<[1], [0], [0], [1], [0, 0, 1, 1], [], []>} : vector<5x32xf32>, vector<32x32xf32>, vector<5x32xf32> -> vector<5x32xf32>
    %c1_106 = arith.constant 1 : index
    %c0_107 = arith.constant 0 : index
    %c0_108 = arith.constant 0 : index
    %218 = vector.load %arg12[%c1_106, %c0_107, %c0_108] : memref<2x1x32xf32, #tpu.memory_space<vmem>>, vector<1x1x32xf32>
    %219 = vector.shape_cast %218 : vector<1x1x32xf32> to vector<1x32xf32>
    %220 = vector.broadcast %219 : vector<1x32xf32> to vector<5x32xf32>
    %221 = arith.addf %217, %220 : vector<5x32xf32>
    %222 = arith.addf %149, %221 : vector<5x32xf32>
    %c1_109 = arith.constant 1 : index
    %c0_110 = arith.constant 0 : index
    %c0_111 = arith.constant 0 : index
    %223 = vector.load %arg13[%c1_109, %c0_110, %c0_111] : memref<2x1x32xf32, #tpu.memory_space<vmem>>, vector<1x1x32xf32>
    %224 = vector.shape_cast %223 : vector<1x1x32xf32> to vector<1x32xf32>
    %c1_112 = arith.constant 1 : index
    %c0_113 = arith.constant 0 : index
    %c0_114 = arith.constant 0 : index
    %225 = vector.load %arg14[%c1_112, %c0_113, %c0_114] : memref<2x1x32xf32, #tpu.memory_space<vmem>>, vector<1x1x32xf32>
    %226 = vector.shape_cast %225 : vector<1x1x32xf32> to vector<1x32xf32>
    %cst_115 = arith.constant dense<0.000000e+00> : vector<5xf32>
    %227 = vector.multi_reduction <add>, %222, %cst_115 [1] : vector<5x32xf32> to vector<5xf32>
    %228 = vector.shape_cast %227 : vector<5xf32> to vector<5x1xf32>
    %cst_116 = arith.constant 3.200000e+01 : f32
    %229 = vector.broadcast %cst_116 : f32 to vector<5x1xf32>
    %230 = arith.divf %228, %229 : vector<5x1xf32>
    %231 = vector.broadcast %230 : vector<5x1xf32> to vector<5x32xf32>
    %232 = arith.subf %222, %231 : vector<5x32xf32>
    %233 = arith.mulf %232, %232 : vector<5x32xf32>
    %cst_117 = arith.constant dense<0.000000e+00> : vector<5xf32>
    %234 = vector.multi_reduction <add>, %233, %cst_117 [1] : vector<5x32xf32> to vector<5xf32>
    %235 = vector.shape_cast %234 : vector<5xf32> to vector<5x1xf32>
    %cst_118 = arith.constant 3.200000e+01 : f32
    %236 = vector.broadcast %cst_118 : f32 to vector<5x1xf32>
    %237 = arith.divf %235, %236 : vector<5x1xf32>
    %cst_119 = arith.constant 9.99999974E-6 : f32
    %238 = vector.broadcast %cst_119 : f32 to vector<5x1xf32>
    %239 = arith.addf %237, %238 : vector<5x1xf32>
    %240 = math.rsqrt %239 : vector<5x1xf32>
    %241 = vector.broadcast %240 : vector<5x1xf32> to vector<5x32xf32>
    %242 = arith.mulf %232, %241 : vector<5x32xf32>
    %243 = vector.broadcast %224 : vector<1x32xf32> to vector<5x32xf32>
    %244 = arith.mulf %242, %243 : vector<5x32xf32>
    %245 = vector.broadcast %226 : vector<1x32xf32> to vector<5x32xf32>
    %246 = arith.addf %244, %245 : vector<5x32xf32>
    %c1_120 = arith.constant 1 : index
    %c0_121 = arith.constant 0 : index
    %c0_122 = arith.constant 0 : index
    %247 = vector.load %arg15[%c1_120, %c0_121, %c0_122] : memref<2x32x64xf32, #tpu.memory_space<vmem>>, vector<1x32x64xf32>
    %248 = vector.shape_cast %247 : vector<1x32x64xf32> to vector<32x64xf32>
    %cst_123 = arith.constant dense<0.000000e+00> : vector<5x64xf32>
    %249 = tpu.matmul %246, %248, %cst_123 {dimension_numbers = #tpu.dot_dimension_numbers<[1], [0], [0], [1], [0, 0, 1, 1], [], []>} : vector<5x32xf32>, vector<32x64xf32>, vector<5x64xf32> -> vector<5x64xf32>
    %c1_124 = arith.constant 1 : index
    %c0_125 = arith.constant 0 : index
    %c0_126 = arith.constant 0 : index
    %250 = vector.load %arg16[%c1_124, %c0_125, %c0_126] : memref<2x1x64xf32, #tpu.memory_space<vmem>>, vector<1x1x64xf32>
    %251 = vector.shape_cast %250 : vector<1x1x64xf32> to vector<1x64xf32>
    %252 = vector.broadcast %251 : vector<1x64xf32> to vector<5x64xf32>
    %253 = arith.addf %249, %252 : vector<5x64xf32>
    %cst_127 = arith.constant 1.702000e+00 : f32
    %254 = vector.broadcast %cst_127 : f32 to vector<5x64xf32>
    %255 = arith.mulf %254, %253 : vector<5x64xf32>
    %256 = arith.negf %255 : vector<5x64xf32>
    %257 = math.exp %256 : vector<5x64xf32>
    %cst_128 = arith.constant 1.000000e+00 : f32
    %258 = vector.broadcast %cst_128 : f32 to vector<5x64xf32>
    %259 = arith.addf %258, %257 : vector<5x64xf32>
    %260 = arith.divf %258, %259 : vector<5x64xf32>
    %261 = arith.mulf %253, %260 : vector<5x64xf32>
    %c1_129 = arith.constant 1 : index
    %c0_130 = arith.constant 0 : index
    %c0_131 = arith.constant 0 : index
    %262 = vector.load %arg17[%c1_129, %c0_130, %c0_131] : memref<2x64x32xf32, #tpu.memory_space<vmem>>, vector<1x64x32xf32>
    %263 = vector.shape_cast %262 : vector<1x64x32xf32> to vector<64x32xf32>
    %cst_132 = arith.constant dense<0.000000e+00> : vector<5x32xf32>
    %264 = tpu.matmul %261, %263, %cst_132 {dimension_numbers = #tpu.dot_dimension_numbers<[1], [0], [0], [1], [0, 0, 1, 1], [], []>} : vector<5x64xf32>, vector<64x32xf32>, vector<5x32xf32> -> vector<5x32xf32>
    %c1_133 = arith.constant 1 : index
    %c0_134 = arith.constant 0 : index
    %c0_135 = arith.constant 0 : index
    %265 = vector.load %arg18[%c1_133, %c0_134, %c0_135] : memref<2x1x32xf32, #tpu.memory_space<vmem>>, vector<1x1x32xf32>
    %266 = vector.shape_cast %265 : vector<1x1x32xf32> to vector<1x32xf32>
    %267 = vector.broadcast %266 : vector<1x32xf32> to vector<5x32xf32>
    %268 = arith.addf %264, %267 : vector<5x32xf32>
    %269 = arith.addf %222, %268 : vector<5x32xf32>
    %270 = vector.extract_strided_slice %269 {offsets = [0, 0], sizes = [1, 32], strides = [1, 1]} : vector<5x32xf32> to vector<1x32xf32>
    %c0_136 = arith.constant 0 : index
    %c0_137 = arith.constant 0 : index
    %271 = vector.load %arg19[%c0_136, %c0_137] : memref<1x32xf32, #tpu.memory_space<vmem>>, vector<1x32xf32>
    %c0_138 = arith.constant 0 : index
    %c0_139 = arith.constant 0 : index
    %272 = vector.load %arg20[%c0_138, %c0_139] : memref<1x32xf32, #tpu.memory_space<vmem>>, vector<1x32xf32>
    %cst_140 = arith.constant dense<0.000000e+00> : vector<1xf32>
    %273 = vector.multi_reduction <add>, %270, %cst_140 [1] : vector<1x32xf32> to vector<1xf32>
    %274 = vector.shape_cast %273 : vector<1xf32> to vector<1x1xf32>
    %cst_141 = arith.constant 3.200000e+01 : f32
    %275 = vector.broadcast %cst_141 : f32 to vector<1x1xf32>
    %276 = arith.divf %274, %275 : vector<1x1xf32>
    %277 = vector.broadcast %276 : vector<1x1xf32> to vector<1x32xf32>
    %278 = arith.subf %270, %277 : vector<1x32xf32>
    %279 = arith.mulf %278, %278 : vector<1x32xf32>
    %cst_142 = arith.constant dense<0.000000e+00> : vector<1xf32>
    %280 = vector.multi_reduction <add>, %279, %cst_142 [1] : vector<1x32xf32> to vector<1xf32>
    %281 = vector.shape_cast %280 : vector<1xf32> to vector<1x1xf32>
    %cst_143 = arith.constant 3.200000e+01 : f32
    %282 = vector.broadcast %cst_143 : f32 to vector<1x1xf32>
    %283 = arith.divf %281, %282 : vector<1x1xf32>
    %cst_144 = arith.constant 9.99999974E-6 : f32
    %284 = vector.broadcast %cst_144 : f32 to vector<1x1xf32>
    %285 = arith.addf %283, %284 : vector<1x1xf32>
    %286 = math.rsqrt %285 : vector<1x1xf32>
    %287 = vector.broadcast %286 : vector<1x1xf32> to vector<1x32xf32>
    %288 = arith.mulf %278, %287 : vector<1x32xf32>
    %289 = arith.mulf %288, %271 : vector<1x32xf32>
    %290 = arith.addf %289, %272 : vector<1x32xf32>
    %c0_145 = arith.constant 0 : index
    %c0_146 = arith.constant 0 : index
    %291 = vector.load %arg21[%c0_145, %c0_146] : memref<32x16xf32, #tpu.memory_space<vmem>>, vector<32x16xf32>
    %cst_147 = arith.constant dense<0.000000e+00> : vector<1x16xf32>
    %292 = tpu.matmul %290, %291, %cst_147 {dimension_numbers = #tpu.dot_dimension_numbers<[1], [0], [0], [1], [0, 0, 1, 1], [], []>} : vector<1x32xf32>, vector<32x16xf32>, vector<1x16xf32> -> vector<1x16xf32>
    %c0_148 = arith.constant 0 : index
    %c0_149 = arith.constant 0 : index
    %c0_150 = arith.constant 0 : index
    %293 = vector.load %arg22[%c0_148, %c0_149, %c0_150] : memref<1x1x16xf32, #tpu.memory_space<vmem>>, vector<1x1x16xf32>
    %294 = vector.shape_cast %293 : vector<1x1x16xf32> to vector<1x16xf32>
    %295 = vector.shape_cast %292 : vector<1x16xf32> to vector<1x1x16xf32>
    tpu.vector_store %arg22[%c0_148, %c0_149, %c0_150], %295 {strides = array<i32>} : memref<1x1x16xf32, #tpu.memory_space<vmem>>, vector<1x1x16xf32>,
    return
  }
  func.func @transform_0(%arg0: i32) -> (i32, i32, i32) {
    %c0_i32 = arith.constant 0 : i32
    %c0_i32_0 = arith.constant 0 : i32
    %c0_i32_1 = arith.constant 0 : i32
    return %arg0, %c0_i32, %c0_i32_0 : i32, i32, i32
  }
  func.func @transform_1(%arg0: i32) -> (i32, i32) {
    %c0_i32 = arith.constant 0 : i32
    %c0_i32_0 = arith.constant 0 : i32
    %c0_i32_1 = arith.constant 0 : i32
    return %c0_i32, %c0_i32_0 : i32, i32
  }
  func.func @transform_2(%arg0: i32) -> (i32, i32) {
    %c0_i32 = arith.constant 0 : i32
    %c0_i32_0 = arith.constant 0 : i32
    %c0_i32_1 = arith.constant 0 : i32
    return %c0_i32, %c0_i32_0 : i32, i32
  }
  func.func @transform_3(%arg0: i32) -> (i32, i32) {
    %c0_i32 = arith.constant 0 : i32
    %c0_i32_0 = arith.constant 0 : i32
    %c0_i32_1 = arith.constant 0 : i32
    return %c0_i32, %c0_i32_0 : i32, i32
  }
  func.func @transform_4(%arg0: i32) -> (i32, i32) {
    %c0_i32 = arith.constant 0 : i32
    %c0_i32_0 = arith.constant 0 : i32
    %c0_i32_1 = arith.constant 0 : i32
    return %c0_i32, %c0_i32_0 : i32, i32
  }
  func.func @transform_5(%arg0: i32) -> (i32, i32) {
    %c0_i32 = arith.constant 0 : i32
    %c0_i32_0 = arith.constant 0 : i32
    %c0_i32_1 = arith.constant 0 : i32
    return %c0_i32, %c0_i32_0 : i32, i32
  }
  func.func @transform_6(%arg0: i32) -> (i32, i32, i32) {
    %c0_i32 = arith.constant 0 : i32
    %c0_i32_0 = arith.constant 0 : i32
    %c0_i32_1 = arith.constant 0 : i32
    %c0_i32_2 = arith.constant 0 : i32
    return %c0_i32, %c0_i32_0, %c0_i32_1 : i32, i32, i32
  }
  func.func @transform_7(%arg0: i32) -> (i32, i32, i32) {
    %c0_i32 = arith.constant 0 : i32
    %c0_i32_0 = arith.constant 0 : i32
    %c0_i32_1 = arith.constant 0 : i32
    %c0_i32_2 = arith.constant 0 : i32
    return %c0_i32, %c0_i32_0, %c0_i32_1 : i32, i32, i32
  }
  func.func @transform_8(%arg0: i32) -> (i32, i32, i32) {
    %c0_i32 = arith.constant 0 : i32
    %c0_i32_0 = arith.constant 0 : i32
    %c0_i32_1 = arith.constant 0 : i32
    %c0_i32_2 = arith.constant 0 : i32
    return %c0_i32, %c0_i32_0, %c0_i32_1 : i32, i32, i32
  }
  func.func @transform_9(%arg0: i32) -> (i32, i32, i32) {
    %c0_i32 = arith.constant 0 : i32
    %c0_i32_0 = arith.constant 0 : i32
    %c0_i32_1 = arith.constant 0 : i32
    %c0_i32_2 = arith.constant 0 : i32
    return %c0_i32, %c0_i32_0, %c0_i32_1 : i32, i32, i32
  }
  func.func @transform_10(%arg0: i32) -> (i32, i32, i32) {
    %c0_i32 = arith.constant 0 : i32
    %c0_i32_0 = arith.constant 0 : i32
    %c0_i32_1 = arith.constant 0 : i32
    %c0_i32_2 = arith.constant 0 : i32
    return %c0_i32, %c0_i32_0, %c0_i32_1 : i32, i32, i32
  }
  func.func @transform_11(%arg0: i32) -> (i32, i32, i32) {
    %c0_i32 = arith.constant 0 : i32
    %c0_i32_0 = arith.constant 0 : i32
    %c0_i32_1 = arith.constant 0 : i32
    %c0_i32_2 = arith.constant 0 : i32
    return %c0_i32, %c0_i32_0, %c0_i32_1 : i32, i32, i32
  }
  func.func @transform_12(%arg0: i32) -> (i32, i32, i32) {
    %c0_i32 = arith.constant 0 : i32
    %c0_i32_0 = arith.constant 0 : i32
    %c0_i32_1 = arith.constant 0 : i32
    %c0_i32_2 = arith.constant 0 : i32
    return %c0_i32, %c0_i32_0, %c0_i32_1 : i32, i32, i32
  }
  func.func @transform_13(%arg0: i32) -> (i32, i32, i32) {
    %c0_i32 = arith.constant 0 : i32
    %c0_i32_0 = arith.constant 0 : i32
    %c0_i32_1 = arith.constant 0 : i32
    %c0_i32_2 = arith.constant 0 : i32
    return %c0_i32, %c0_i32_0, %c0_i32_1 : i32, i32, i32
  }
  func.func @transform_14(%arg0: i32) -> (i32, i32, i32) {
    %c0_i32 = arith.constant 0 : i32
    %c0_i32_0 = arith.constant 0 : i32
    %c0_i32_1 = arith.constant 0 : i32
    %c0_i32_2 = arith.constant 0 : i32
    return %c0_i32, %c0_i32_0, %c0_i32_1 : i32, i32, i32
  }
  func.func @transform_15(%arg0: i32) -> (i32, i32, i32) {
    %c0_i32 = arith.constant 0 : i32
    %c0_i32_0 = arith.constant 0 : i32
    %c0_i32_1 = arith.constant 0 : i32
    %c0_i32_2 = arith.constant 0 : i32
    return %c0_i32, %c0_i32_0, %c0_i32_1 : i32, i32, i32
  }
  func.func @transform_16(%arg0: i32) -> (i32, i32, i32) {
    %c0_i32 = arith.constant 0 : i32
    %c0_i32_0 = arith.constant 0 : i32
    %c0_i32_1 = arith.constant 0 : i32
    %c0_i32_2 = arith.constant 0 : i32
    return %c0_i32, %c0_i32_0, %c0_i32_1 : i32, i32, i32
  }
  func.func @transform_17(%arg0: i32) -> (i32, i32, i32) {
    %c0_i32 = arith.constant 0 : i32
    %c0_i32_0 = arith.constant 0 : i32
    %c0_i32_1 = arith.constant 0 : i32
    %c0_i32_2 = arith.constant 0 : i32
    return %c0_i32, %c0_i32_0, %c0_i32_1 : i32, i32, i32
  }
  func.func @transform_18(%arg0: i32) -> (i32, i32) {
    %c0_i32 = arith.constant 0 : i32
    %c0_i32_0 = arith.constant 0 : i32
    %c0_i32_1 = arith.constant 0 : i32
    return %c0_i32, %c0_i32_0 : i32, i32
  }
  func.func @transform_19(%arg0: i32) -> (i32, i32) {
    %c0_i32 = arith.constant 0 : i32
    %c0_i32_0 = arith.constant 0 : i32
    %c0_i32_1 = arith.constant 0 : i32
    return %c0_i32, %c0_i32_0 : i32, i32
  }
  func.func @transform_20(%arg0: i32) -> (i32, i32) {
    %c0_i32 = arith.constant 0 : i32
    %c0_i32_0 = arith.constant 0 : i32
    %c0_i32_1 = arith.constant 0 : i32
    return %c0_i32, %c0_i32_0 : i32, i32
  }
  func.func @transform_21(%arg0: i32) -> (i32, i32, i32) {
    %c0_i32 = arith.constant 0 : i32
    %c0_i32_0 = arith.constant 0 : i32
    %c0_i32_1 = arith.constant 0 : i32
    return %arg0, %c0_i32, %c0_i32_0 : i32, i32, i32
  }
}

</mosaic_0001>

<bundles_post_ra>
// kernel: clip_image_embeddings.1
= control target key start
LH: loop header
LB: loop body
LE: loop exit
PB: predicated region body
PF: predicated region fallthrough
CT: control target
= control target key end

     0   :  { %s3666_s0 = inlined_call_operand.vmem [shape: f32[2,4,192], index: 0, kind: input, shape index: {}]   ;;  %s3667_s1 = inlined_call_operand.vmem [shape: f32[192,32], index: 1, kind: input, shape index: {}]   ;;  %s3668_s2 = inlined_call_operand.vmem [shape: f32[1,32], index: 2, kind: input, shape index: {}]   ;;  %s3669_s3 = inlined_call_operand.vmem [shape: f32[5,32], index: 3, kind: input, shape index: {}]   ;;  %s3670_s4 = inlined_call_operand.vmem [shape: f32[1,32], index: 4, kind: input, shape index: {}, may-alias: {4,18}]   ;;  %s3671_s5 = inlined_call_operand.vmem [shape: f32[1,32], index: 5, kind: input, shape index: {}, may-alias: {5,19}]   ;;  %s3672_s6 = inlined_call_operand.vmem [shape: f32[2,1,32], index: 6, kind: input, shape index: {}, may-alias: {6,12}]   ;;  %s3673_s7 = inlined_call_operand.vmem [shape: f32[2,1,32], index: 7, kind: input, shape index: {}, may-alias: {7,13}]   ;;  %s3674_s8 = inlined_call_operand.vmem [shape: f32[2,32,96], index: 8, kind: input, shape index: {}]   ;;  %s3675_s9 = inlined_call_operand.vmem [shape: f32[2,1,96], index: 9, kind: input, shape index: {}]   ;;  %s3676_s10 = inlined_call_operand.vmem [shape: f32[2,32,32], index: 10, kind: input, shape index: {}]   ;;  %s3677_s11 = inlined_call_operand.vmem [shape: f32[2,1,32], index: 11, kind: input, shape index: {}]   ;;  %s3678_s12 = inlined_call_operand.vmem [shape: f32[2,1,32], index: 12, kind: input, shape index: {}, may-alias: {6,12}]   ;;  %s3679_s13 = inlined_call_operand.vmem [shape: f32[2,1,32], index: 13, kind: input, shape index: {}, may-alias: {7,13}]   ;;  %s3680_s14 = inlined_call_operand.vmem [shape: f32[2,32,64], index: 14, kind: input, shape index: {}]   ;;  %s3681_s15 = inlined_call_operand.vmem [shape: f32[2,1,64], index: 15, kind: input, shape index: {}]   ;;  %s3682_s16 = inlined_call_operand.vmem [shape: f32[2,64,32], index: 16, kind: input, shape index: {}]   ;;  %s3683_s17 = inlined_call_operand.vmem [shape: f32[2,1,32], index: 17, kind: input, shape index: {}]   ;;  %s3684_s18 = inlined_call_operand.vmem [shape: f32[1,32], index: 18, kind: input, shape index: {}, may-alias: {4,18}]   ;;  %s3685_s19 = inlined_call_operand.vmem [shape: f32[1,32], index: 19, kind: input, shape index: {}, may-alias: {5,19}]   ;;  %s3686_s20 = inlined_call_operand.vmem [shape: f32[32,16], index: 20, kind: input, shape index: {}]   ;;  %s3687_s21 = inlined_call_operand.hbm [shape: f32[2,1,16], index: 21, kind: output, shape index: {}]  }
   0x1   :  { %3699 = sst [smem:[#allocation12_spill]] %s3666_s0 }
   0x2   :  { %3700 = sst [smem:[#allocation13_spill]] %s3667_s1 }
   0x3   :  { %3701 = sst [smem:[#allocation14_spill]] %s3668_s2 }
   0x4   :  { %3702 = sst [smem:[#allocation15_spill]] %s3669_s3 }
   0x5   :  { %3703 = sst [smem:[#allocation16_spill]] %s3670_s4 }
   0x6   :  { %3704 = sst [smem:[#allocation17_spill]] %s3671_s5 }
   0x7   :  { %3705 = sst [smem:[#allocation18_spill]] %s3687_s21 }
   0x8   :  { %26 = vsyncpa [#allocation3], 0 }
   0x9   :  { %28 = vsyncpa [#allocation3 + $0x1], 0  ;;  %s3142_s2 = smov 0   ;;  %s3144_s25 = smov 0  }
   0xa   :  { %s3146_s26 = smov 0   ;;  %s3148_s27 = smov 0  }
   0xb LB: > { %3706 = sst [smem:[#allocation5_spill]] %s3008_s2  ;;  %s3163_s3 = sadd.s32 4294967295, %s3020_s27   ;;  %s3020_s27 = sphi %s3148_s27, %s3728_s27   ;;  %s3016_s26 = sphi %s3146_s26, %s3733_s26   ;;  %s3012_s25 = sphi %s3144_s25, %s3732_s25   ;;  %s3008_s2 = sphi %s3142_s2, %s3731_s2  }
   0xc   : > { %3707 = sst [smem:[#allocation6_spill]] %s3016_s26  ;;  %s2463_s28 = sadd.s32 4294967294, %s3020_s27  }
   0xd   : > { %3708 = sst [smem:[#allocation7_spill]] %s3020_s27  ;;  %s3167_s29 = sadd.s32 1, %s3020_s27  }
   0xe   : > { %3709 = sst [smem:[#allocation8_spill]] %s3167_s29  ;;  %s487_s0 = sadd.s32 1, %s3016_s26 }
   0xf   : > { %s484_s4 = ssub.s32 %s3020_s27, %s3167_s29  ;;  %p497_p0 = scmp.ne.s32.totalorder %s3016_s26, %s3012_s25 }
  0x10   : > { %p485_p1 = scmp.eq.s32.totalorder %s484_s4, 0  ;;  %p498_p2 = scmp.eq.s32.totalorder %s3163_s3, 1 }
  0x11   : > { %p503_p3 = scmp.ne.s32.totalorder %s3012_s25, %s3008_s2  ;;  %p504_p4 = scmp.eq.s32.totalorder %s2463_s28, 1 }
  0x12   : > { %s3178_s30 = scalar_select %p485_p1, %s3016_s26, %s487_s0  }
  0x13   : > { %p3180_p5 = por %p498_p2, %p497_p0  ;;  %p3184_p6 = por %p504_p4, %p503_p3 }
  0x14   : > { %3710 = sst [smem:[#allocation9_spill]] %s3178_s30  ;;  %p2466_p7 = scmp.ge.s32.totalorder %s3020_s27, 1 }
  0x15   : > { %s3711_s5 = scalar_select %p3180_p5, 1, 0 }
  0x16   : > { %s3713_s22 = scalar_select %p3184_p6, 1, 0 }
  0x17   : > { %3712 = sst [smem:[#allocation10_spill]] %s3711_s5  ;;  %p590_p8 = scmp.lt.s32.totalorder %s3020_s27, 3 }
  0x18   : > { %3714 = sst [smem:[#allocation11_spill]] %s3713_s22 }
  0x19   : > { %p591_p9 = pnand %p2466_p7, %p590_p8 }
  0x1a   : > { %s3715_s24 = sld [smem:[#allocation13_spill]] (!%p591_p9)  ;;  %p649_p10 = scmp.lt.s32.totalorder (!%p591_p9), %s3163_s3, 1  ;;  %v3022_v3 = vmov (!%p591_p9), 0.0|0.0   ;;  %vm681_vm0 = vcmask (!%p591_p9), 523264   ;;  %vm758_vm1 = vcmask (!%p591_p9), 1040384   ;;  %vm764_vm2 = vcmask (!%p591_p9), 258048  }
  0x1b   : > { %594 = sbr.rel (%p591_p9) target bundleno = 6661 (0x1a05), region = 104  ;;  %2771 = vmatprep.subr.bf16.mxu0 (!%p591_p9), %v3022_v3  ;;  %2807 = vmatprep.subr.bf16.mxu1 (!%p591_p9), %v3022_v3  ;;  %s3716_s26 = sld [smem:[#allocation12_spill]] (!%p591_p9)  ;;  %vm3023_vm3 = vmmov (!%p591_p9), 0   ;;  %vm833_vm4 = vcmask (!%p591_p9), 261120   ;;  %vm910_vm5 = vcmask (!%p591_p9), 130048   ;;  %vm985_vm6 = vcmask (!%p591_p9), 36864  }
  0x1c   : > { %s3717_s0 = sld [smem:[#allocation14_spill]] (!%p591_p9)  ;;  %s3719_s22 = sld [smem:[#allocation16_spill]] (!%p591_p9)  ;;  %vm1003_vm7 = vcmask (!%p591_p9), 1044480   ;;  %vm999_vm8 = vcmask (!%p591_p9), 39936   ;;  %vm2300_vm9 = vcmask (!%p591_p9), 253952   ;;  %vm2393_vm10 = vcmask (!%p591_p9), 122880  }
  0x1d   : > { %s3720_s27 = sld [smem:[#allocation17_spill]] (!%p591_p9)  ;;  %s3025_s28 = smov (!%p591_p9), 96  }
  0x1e   : > { %s3026_s30 = smov (!%p591_p9), 80   ;;  %s2543_s1 = sshll.u32 (!%p591_p9), %s3163_s3, 4 }
  0x20   : > { %v655_v0 = vld [vmem:[%s3715_s24] sm:$0xff] (!%p591_p9)  ;;  %v656_v1 = vld [vmem:[%s3715_s24 + $0x8] sm:$0xff] (!%p591_p9)  ;;  %v657_v2 = vld [vmem:[%s3715_s24 + $0x10] sm:$0xff] (!%p591_p9) }
  0x21   : > { %v2772_v4 = vpack.c.bf16 (!%p591_p9), %v656_v1, %v655_v0  ;;  %v658_v5 = vld [vmem:[%s3715_s24 + $0x18] sm:$0xff] (!%p591_p9)  ;;  %v659_v7 = vld [vmem:[%s3715_s24 + $0x20] sm:$0xff] (!%p591_p9)  ;;  %v660_v8 = vld [vmem:[%s3715_s24 + $0x28] sm:$0xff] (!%p591_p9) }
  0x22   : > { %s650_s23 = scalar_select %p649_p10, %s3163_s3, 1  ;;  %v2775_v6 = vpack.c.bf16 %v658_v5, %v657_v2  ;;  %v2778_v9 = vpack.c.bf16 %v660_v8, %v659_v7  ;;  %v661_v10 = vld [vmem:[%s3715_s24 + $0x30] sm:$0xff]  ;;  %v662_v11 = vld [vmem:[%s3715_s24 + $0x38] sm:$0xff]  ;;  %v663_v15 = vld [vmem:[%s3715_s24 + $0x40] sm:$0xff] }
  0x23   : > { %2773 = vmatpush1.bf16.msra.mxu0 %v2772_v4  ;;  %v2781_v14 = vpack.c.bf16 %v662_v11, %v661_v10  ;;  %v664_v16 = vld [vmem:[%s3715_s24 + $0x48] sm:$0xff]  ;;  %v665_v18 = vld [vmem:[%s3715_s24 + $0x50] sm:$0xff]  ;;  %v666_v19 = vld [vmem:[%s3715_s24 + $0x58] sm:$0xff]  ;;  %s3031_s3 = smov [#allocation2]  }
  0x24   : > { %2774 = vmatprep.subr.bf16.mxu0 %v3022_v3  ;;  %s2546_s4 = sshll.u32 %s650_s23, 3  ;;  %v2784_v17 = vpack.c.bf16 %v664_v16, %v663_v15  ;;  %v2787_v20 = vpack.c.bf16 %v666_v19, %v665_v18  ;;  %v667_v21 = vld [vmem:[%s3715_s24 + $0x60] sm:$0xff]  ;;  %v668_v22 = vld [vmem:[%s3715_s24 + $0x68] sm:$0xff]  ;;  %v669_v24 = vld [vmem:[%s3715_s24 + $0x70] sm:$0xff]  ;;  %s3721_s23 = smov 16  }
  0x25   : > { %s653_s29 = scalar_lea.vmem %s3716_s26, %s2546_s4  ;;  %v2790_v23 = vpack.c.bf16 %v668_v22, %v667_v21  ;;  %v670_v25 = vld [vmem:[%s3715_s24 + $0x78] sm:$0xff]  ;;  %v671_v27 = vld [vmem:[%s3715_s24 + $0x80] sm:$0xff]  ;;  %v672_v28 = vld [vmem:[%s3715_s24 + $0x88] sm:$0xff]  ;;  %s3028_s4 = smov 112  }
  0x26   : > { %v654_v12 = vld [vmem:[%s653_s29] sm:$0xff]  ;;  %v2793_v26 = vpack.c.bf16 %v670_v25, %v669_v24  ;;  %v2796_v29 = vpack.c.bf16 %v672_v28, %v671_v27  ;;  %v673_v30 = vld [vmem:[%s3715_s24 + $0x90] sm:$0xff]  ;;  %v674_v31 = vld [vmem:[%s3715_s24 + $0x98] sm:$0xff]  ;;  %s3718_s29 = sld [smem:[#allocation15_spill]]  ;;  %s3029_s26 = smov 48  }
  0x27   : > { %2776 = vmatpush1.bf16.msra.mxu0 %v2775_v6  ;;  %v680_v13 = vcombine.high %v654_v12, %v654_v12  ;;  %v2799_v32 = vpack.c.bf16 %v674_v31, %v673_v30  ;;  %v675_v33 = vld [vmem:[%s3715_s24 + $0xa0] sm:$0xff]  ;;  %v676_v34 = vld [vmem:[%s3715_s24 + $0xa8] sm:$0xff]  ;;  %v677_v36 = vld [vmem:[%s3715_s24 + $0xb0] sm:$0xff] }
  0x28   : > { %2777 = vmatprep.subr.bf16.mxu0 %v3022_v3  ;;  %v2802_v35 = vpack.c.bf16 %v676_v34, %v675_v33  ;;  %v678_v37 = vld [vmem:[%s3715_s24 + $0xb8] sm:$0xff]  ;;  %v754_v40 = vld [vmem:[%s3717_s0] sm:$0x1]  ;;  %v823_v5 = vld [vmem:[%s3674_s8 + $0x8] sm:$0xff]  ;;  %s3027_s0 = smov 64  }
  0x29   : > { %2469 = vmatprep.mubr.msk.f32.mxu0 %vm681_vm0, %v680_v13  ;;  %v2805_v38 = vpack.c.bf16 %v678_v37, %v677_v36  ;;  %v2470_v56 = vld [vmem:[%s3719_s22] ss:$0 sm:$0xff]  ;;  %v824_v6 = vld [vmem:[%s3674_s8 + $0x10] sm:$0xff]  ;;  %v825_v8 = vld [vmem:[%s3674_s8 + $0x18] sm:$0xff] }
  0x2a   : > { %v2471_v58 = vld [vmem:[%s3720_s27] ss:$0 sm:$0xff]  ;;  %v2811_v10 = vpack.c.bf16 %v825_v8, %v824_v6  ;;  %s3723_s27 = sld [smem:[#allocation18_spill]] }
  0x2b   : > { %2779 = vmatpush1.bf16.msra.mxu0 %v2778_v9  ;;  %v822_v4 = vld [vmem:[%s3674_s8] sm:$0xff]  ;;  %v3024_v9 = vmov 0.0  }
  0x2c   : > { %2780 = vmatprep.subr.bf16.mxu0 %v3022_v3  ;;  %v760_v43 = vld [vmem:[%s3718_s29] sm:$0x1f]  ;;  %v2808_v7 = vpack.c.bf16 %v823_v5, %v822_v4  ;;  %2624 = vmatprep.mubr.msk.f32.mxu1 %vm3023_vm3, %v3024_v9  ;;  %s3698_s29 = smov 16  }
  0x2d   : > { %v2472_v15 = vld [vmem:[%s3672_s6] ss:$0 sm:$0xff] }
  0x2e   : > { %2809 = vmatpush3.bf16.msra.mxu1 %v2808_v7 }
  0x2f   : > { %2782 = vmatpush1.bf16.msra.mxu0 %v2781_v14  ;;  %2810 = vmatprep.subr.bf16.mxu1 %v3022_v3 }
  0x30   : > { %2783 = vmatprep.subr.bf16.mxu0 %v3022_v3  ;;  %s3624_s5 = scalar_lea.hbm %s3723_s27, %s2543_s1 }
  0x32   : > { %2812 = vmatpush3.bf16.msra.mxu1 %v2811_v10 }
  0x33   : > { %2785 = vmatpush1.bf16.msra.mxu0 %v2784_v17  ;;  %2627 = vmatprep.subr.mxu1 %v3024_v9  ;;  %v2473_v17 = vld [vmem:[%s3673_s7] ss:$0 sm:$0xff] }
  0x34   : > { %2786 = vmatprep.subr.bf16.mxu0 %v3022_v3 }
  0x37   : > { %2788 = vmatpush1.bf16.msra.mxu0 %v2787_v20  ;;  %v2474_v20 = vld [vmem:[%s3675_s9] ss:$0 sm:$0xff] }
  0x38   : > { %2789 = vmatprep.subr.bf16.mxu0 %v3022_v3 }
  0x3b   : > { %2791 = vmatpush1.bf16.msra.mxu0 %v2790_v23 }
  0x3c   : > { %2792 = vmatprep.subr.bf16.mxu0 %v3022_v3 }
  0x3f   : > { %2794 = vmatpush1.bf16.msra.mxu0 %v2793_v26 }
  0x40   : > { %2795 = vmatprep.subr.bf16.mxu0 %v3022_v3 }
  0x43   : > { %2797 = vmatpush1.bf16.msra.mxu0 %v2796_v29 }
  0x44   : > { %2798 = vmatprep.subr.bf16.mxu0 %v3022_v3 }
  0x47   : > { %2800 = vmatpush1.bf16.msra.mxu0 %v2799_v32 }
  0x48   : > { %2801 = vmatprep.subr.bf16.mxu0 %v3022_v3 }
  0x4b   : > { %2803 = vmatpush1.bf16.msra.mxu0 %v2802_v35 }
  0x4c   : > { %2804 = vmatprep.subr.bf16.mxu0 %v3022_v3 }
  0x4f   : > { %2806 = vmatpush1.bf16.msra.mxu0 %v2805_v38 }
  0x50   : > { %2837 = vmatprep.subr.bf16.mxu0 %v3022_v3 }
  0x52   : > { %749 = vmatmul.mubr.f32.vlgmr.msra.gmra.mrb[0].mxu0 %v654_v12 }
  0x53   : > { %2696 = vmatprep.mubr.msk.f32.mxu0 %vm3023_vm3, %v3024_v9 }
 0x125   : > { %v750_v39 = vpop.f32.mrb[0].mxu0 }
 0x126   : > { %v756_v41 = vrot.slane %v750_v39, 7  ;;  %v752_v42 = vpop.f32.mrb[1].mxu0 }
 0x128   : > { %v759_v44 = vsel %vm758_vm1, %v754_v40, %v756_v41 }
 0x129   : > { %v761_v45 = vadd.f32 %v760_v43, %v759_v44 }
 0x12b   : > { %v765_v46 = vsel %vm764_vm2, %v761_v45, 0.0 }
 0x12c   : > { %766 = vadd.xlane.f32.xlu0 %v765_v46 }
 0x1b9   : > { %v767_v47 = vpop.xlane.xlu0 %766 }
 0x1ba   : > { %v769_v48 = vmul.f32 0.03125, %v767_v47 }
 0x1bc   : > { %v770_v49 = vsub.f32 %v761_v45, %v769_v48 }
 0x1be   : > { %v771_v50 = vmul.f32 %v770_v49, %v770_v49 }
 0x1c0   : > { %v772_v51 = vsel %vm764_vm2, %v771_v50, 0.0 }
 0x1c1   : > { %773 = vadd.xlane.f32.xlu0 %v772_v51 }
 0x24e   : > { %v774_v52 = vpop.xlane.xlu0 %773 }
 0x24f   : > { %v775_v53 = vmul.f32 0.03125, %v774_v52 }
 0x251   : > { %v776_v54 = vadd.f32 1e-05, %v775_v53  ;;  %v1247_v53 = vld [vmem:[%s3676_s10] sm:$0xff] }
 0x253   : > { %2922 = vrsqrt.f32 %v776_v54  ;;  %v1248_v54 = vld [vmem:[%s3676_s10 + $0x8] sm:$0xff] }
 0x25d   : > { %v2923_v55 = vpop.eup %2922 }
 0x25e   : > { %v778_v57 = vmul.f32 %v2923_v55, %v770_v49  ;;  %v1249_v55 = vld [vmem:[%s3676_s10 + $0x10] sm:$0xff] }
 0x260   : > { %v785_v59 = vmul.f32 %v2470_v56, %v778_v57  ;;  %v2814_v56 = vpack.c.bf16 %v1248_v54, %v1247_v53  ;;  %v1250_v57 = vld [vmem:[%s3676_s10 + $0x18] sm:$0xff] }
 0x262   : > { %v3296_v60 = vadd.f32 %v2471_v58, %v785_v59  ;;  %v2817_v58 = vpack.c.bf16 %v1250_v57, %v1249_v55 }
 0x264   : > { %v795_v61 = vsel %vm764_vm2, %v3296_v60, 0.0 }
 0x265   : > { %796 = vadd.xlane.f32.xlu1 %v795_v61 }
 0x2f2   : > { %v797_v62 = vpop.xlane.xlu1 %796 }
 0x2f3   : > { %v798_v63 = vmul.f32 0.03125, %v797_v62 }
 0x2f5   : > { %v799_v0 = vsub.f32 %v3296_v60, %v798_v63 }
 0x2f7   : > { %v800_v1 = vmul.f32 %v799_v0, %v799_v0 }
 0x2f9   : > { %v801_v2 = vsel %vm764_vm2, %v800_v1, 0.0 }
 0x2fa   : > { %802 = vadd.xlane.f32.xlu1 %v801_v2 }
 0x387   : > { %v803_v11 = vpop.xlane.xlu1 %802 }
 0x388   : > { %v804_v12 = vmul.f32 0.03125, %v803_v11 }
 0x38a   : > { %v805_v13 = vadd.f32 1e-05, %v804_v12 }
 0x38c   : > { %2924 = vrsqrt.f32 %v805_v13  ;;  %v1361_v13 = vld [vmem:[%s3680_s14] sm:$0xff] }
 0x396   : > { %v2925_v14 = vpop.eup %2924 }
 0x397   : > { %v807_v16 = vmul.f32 %v2925_v14, %v799_v0  ;;  %v2484_v0 = vld [vmem:[%s3677_s11] ss:$0 sm:$0xff] }
 0x399   : > { %v814_v18 = vmul.f32 %v2472_v15, %v807_v16  ;;  %v1363_v15 = vld [vmem:[%s3680_s14 + $0x10] sm:$0xff]  ;;  %v1364_v16 = vld [vmem:[%s3680_s14 + $0x18] sm:$0xff] }
 0x39b   : > { %v821_v19 = vadd.f32 %v2473_v17, %v814_v18  ;;  %v2823_v17 = vpack.c.bf16 %v1364_v16, %v1363_v15 }
 0x39d   : > { %2625 = vmatmul.mubr.msk.f32.vlgmr.msra.gmra.mrb[0].mxu1 %vm833_vm4, %v821_v19 }
 0x39e   : > { %2629 = vmatprep.mubr.msk.f32.mxu1 %vm3023_vm3, %v3024_v9 }
 0x470   : > { %v903_v21 = vpop.f32.mrb[0].mxu1 }
 0x471   : > { %v904_v22 = vadd.f32 %v2474_v20, %v903_v21  ;;  %v2626_v23 = vpop.f32.mrb[1].mxu1 }
 0x473   : > { %908 = vrot.lane.b32.xlu0 %v904_v22, %s3025_s28 }
 0x477   : > { %1078 = vrot.lane.b32.xlu0 %v904_v22, %s3026_s30 }
 0x4e5   : > { %v909_v24 = vpop.permute.xlu0 %908 }
 0x4e6   : > { %2628 = vmatpush3.xpose.msk.msra.mxu1 %vm910_vm5, %v909_v24  ;;  %v2487_v24 = vld [vmem:[%s3679_s13] ss:$0 sm:$0xff] }
 0x4e7   : > { %2632 = vmatprep.subr.mxu1 %v3024_v9 }
 0x4e9   : > { %2630 = vmatmul.mubr.msk.f32.vlgmr.msra.gmra.mrb[2].mxu1 %vm910_vm5, %v904_v22  ;;  %v1079_v37 = vpop.permute.xlu0 %1078 }
 0x4ea   : > { %2634 = vmatprep.mubr.msk.f32.mxu1 %vm3023_vm3, %v3024_v9 }
 0x5bc   : > { %v981_v25 = vpop.f32.mrb[2].mxu1 }
 0x5bd   : > { %v2631_v26 = vpop.f32.mrb[3].mxu1  ;;  %v986_v27 = vsel %vm985_vm6, %v981_v25, -inf }
 0x5be   : > { %987 = vmax.xlane.f32.xlu1 %v986_v27  ;;  %v1453_v27 = vld [vmem:[%s3682_s16] sm:$0xff] }
 0x5cf   : > { %997 = vrot.lane.b32.xlu1 %v904_v22, %s3027_s0 }
 0x64b   : > { %v988_v28 = vpop.xlane.xlu1 %987 }
 0x64c   : > { %v989_v29 = vsub.f32 %v981_v25, %v988_v28  ;;  %v1454_v28 = vld [vmem:[%s3682_s16 + $0x8] sm:$0xff] }
 0x64e   : > { %v990_v30 = vmul.f32 1.442695, %v989_v29  ;;  %v2826_v29 = vpack.c.bf16 %v1454_v28, %v1453_v27 }
 0x64f   : > { %v998_v31 = vpop.permute.xlu1 %997 }
 0x650   : > { %2926 = vpow2.f32 %v990_v30  ;;  %2633 = vmatpush3.msk.msra.mxu1 %vm1003_vm7, %v998_v31  ;;  %v1455_v30 = vld [vmem:[%s3682_s16 + $0x10] sm:$0xff]  ;;  %v1456_v31 = vld [vmem:[%s3682_s16 + $0x18] sm:$0xff] }
 0x651   : > { %2637 = vmatprep.subr.mxu1 %v3024_v9 }
 0x65a   : > { %v2927_v32 = vpop.eup %2926 }
 0x65b   : > { %v992_v33 = vsel %vm985_vm6, %v2927_v32, 0.0 }
 0x65c   : > { %993 = vadd.xlane.f32.xlu1 %v992_v33  ;;  %v1457_v33 = vld [vmem:[%s3682_s16 + $0x20] sm:$0xff] }
 0x66d   : > { %1076 = vrot.lane.b32.xlu1 %v904_v22, %s3028_s4 }
 0x6e9   : > { %v994_v34 = vpop.xlane.xlu1 %993 }
 0x6ea   : > { %2928 = vrcp.f32 %v994_v34  ;;  %v1458_v34 = vld [vmem:[%s3682_s16 + $0x28] sm:$0xff] }
 0x6ed   : > { %v1077_v38 = vpop.permute.xlu1 %1076 }
 0x6f4   : > { %v2929_v35 = vpop.eup %2928 }
 0x6f5   : > { %v996_v36 = vmul.f32 %v2929_v35, %v2927_v32  ;;  %v2829_v32 = vpack.c.bf16 %v1456_v31, %v1455_v30  ;;  %v2832_v35 = vpack.c.bf16 %v1458_v34, %v1457_v33 }
 0x6f7   : > { %2635 = vmatmul.mubr.msk.f32.vlgmr.msra.gmra.mrb[4].mxu1 %vm999_vm8, %v996_v36  ;;  %v1459_v36 = vld [vmem:[%s3682_s16 + $0x30] sm:$0xff] }
 0x6f8   : > { %2638 = vmatpush3.xpose.msk.msra.mxu1 %vm910_vm5, %v1079_v37  ;;  %2639 = vmatprep.mubr.msk.f32.mxu1 %vm3023_vm3, %v3024_v9  ;;  %v1460_v37 = vld [vmem:[%s3682_s16 + $0x38] sm:$0xff] }
 0x6f9   : > { %2642 = vmatprep.subr.mxu1 %v3024_v9 }
 0x6fb   : > { %2640 = vmatmul.mubr.msk.f32.vlgmr.msra.gmra.mrb[6].mxu1 %vm910_vm5, %v1077_v38  ;;  %v2835_v38 = vpack.c.bf16 %v1460_v37, %v1459_v36 }
 0x6fc   : > { %2644 = vmatprep.mubr.msk.f32.mxu1 %vm3023_vm3, %v3024_v9 }
 0x7ca   : > { %v1072_v39 = vpop.f32.mrb[4].mxu1 }
 0x7cb   : > { %v2636_v40 = vpop.f32.mrb[5].mxu1 }
 0x7ce   : > { %v1150_v41 = vpop.f32.mrb[6].mxu1 }
 0x7cf   : > { %v2641_v42 = vpop.f32.mrb[7].mxu1  ;;  %v1154_v43 = vsel %vm985_vm6, %v1150_v41, -inf }
 0x7d0   : > { %1155 = vmax.xlane.f32.xlu0 %v1154_v43 }
 0x7e6   : > { %1165 = vrot.lane.b32.xlu0 %v904_v22, %s3029_s26  ;;  %v2486_v22 = vld [vmem:[%s3678_s12] ss:$0 sm:$0xff] }
 0x85d   : > { %v1156_v44 = vpop.xlane.xlu0 %1155 }
 0x85e   : > { %v1157_v45 = vsub.f32 %v1150_v41, %v1156_v44 }
 0x860   : > { %v1158_v46 = vmul.f32 1.442695, %v1157_v45 }
 0x861   : > { %v1166_v47 = vpop.permute.xlu0 %1165 }
 0x862   : > { %2930 = vpow2.f32 %v1158_v46  ;;  %2643 = vmatpush3.msk.msra.mxu1 %vm1003_vm7, %v1166_v47 }
 0x863   : > { %2813 = vmatprep.subr.bf16.mxu1 %v3022_v3 }
 0x86c   : > { %v2931_v48 = vpop.eup %2930 }
 0x86d   : > { %v1160_v49 = vsel %vm985_vm6, %v2931_v48, 0.0 }
 0x86e   : > { %1161 = vadd.xlane.f32.xlu1 %v1160_v49  ;;  %v2491_v49 = vld [vmem:[%s3683_s17] ss:$0 sm:$0xff] }
 0x8fb   : > { %v1162_v50 = vpop.xlane.xlu1 %1161 }
 0x8fc   : > { %2932 = vrcp.f32 %v1162_v50 }
 0x906   : > { %v2933_v51 = vpop.eup %2932 }
 0x907   : > { %v1164_v52 = vmul.f32 %v2933_v51, %v2931_v48 }
 0x909   : > { %2645 = vmatmul.mubr.msk.f32.vlgmr.msra.gmra.mrb[8].mxu1 %vm999_vm8, %v1164_v52 }
 0x90a   : > { %2655 = vmatprep.mubr.msk.f32.mxu1 %vm3023_vm3, %v3024_v9  ;;  %2815 = vmatpush3.bf16.msra.mxu1 %v2814_v56 }
 0x90b   : > { %2816 = vmatprep.subr.bf16.mxu1 %v3022_v3 }
 0x90e   : > { %2818 = vmatpush3.bf16.msra.mxu1 %v2817_v58 }
 0x90f   : > { %2819 = vmatprep.subr.bf16.mxu1 %v3022_v3 }
 0x9dc   : > { %v1238_v59 = vpop.f32.mrb[8].mxu1 }
 0x9dd   : > { %1243 = vrot.lane.b32.xlu1 %v1238_v59, %s3698_s29  ;;  %v2646_v61 = vpop.f32.mrb[9].mxu1  ;;  %s3724_s29 = smov %s3723_s27 }
 0x9de   : > { %v2497_v61 = vld [vmem:[%s3674_s8 + $0x20] sm:$0xff] }
 0xa4f   : > { %v1244_v62 = vpop.permute.xlu1 %1243 }
 0xa50   : > { %v1246_v63 = vsel %vm910_vm5, %v1072_v39, %v1244_v62  ;;  %v2488_v39 = vld [vmem:[%s3681_s15] ss:$0 sm:$0xff]  ;;  %v2498_v62 = vld [vmem:[%s3674_s8 + $0x28] sm:$0xff] }
 0xa51   : > { %2656 = vmatmul.mubr.msk.f32.vlgmr.msra.gmra.mrb[10].mxu1 %vm833_vm4, %v1246_v63  ;;  %v2838_v63 = vpack.c.bf16 %v2498_v62, %v2497_v61 }
 0xa52   : > { %2666 = vmatprep.mubr.msk.f32.mxu1 %vm3023_vm3, %v3024_v9 }
 0xa53   : > { %2839 = vmatpush3.bf16.msra.mxu0 %v2838_v63 }
 0xa54   : > { %2840 = vmatprep.subr.bf16.mxu0 %v3022_v3 }
 0xb24   : > { %v1327_v1 = vpop.f32.mrb[10].mxu1 }
 0xb25   : > { %v1328_v2 = vadd.f32 %v2484_v0, %v1327_v1  ;;  %v2657_v4 = vpop.f32.mrb[11].mxu1  ;;  %v2499_v0 = vld [vmem:[%s3674_s8 + $0x30] sm:$0xff]  ;;  %v2500_v1 = vld [vmem:[%s3674_s8 + $0x38] sm:$0xff] }
 0xb27   : > { %v3384_v5 = vadd.f32 %v1328_v2, %v3296_v60  ;;  %v1362_v60 = vld [vmem:[%s3680_s14 + $0x8] sm:$0xff]  ;;  %v2841_v2 = vpack.c.bf16 %v2500_v1, %v2499_v0 }
 0xb28   : > { %v2820_v14 = vpack.c.bf16 %v1362_v60, %v1361_v13  ;;  %v2502_v60 = vld [vmem:[%s3675_s9 + $0x1] ss:$0 sm:$0xff] }
 0xb29   : > { %v1334_v6 = vsel %vm764_vm2, %v3384_v5, 0.0  ;;  %2842 = vmatpush3.bf16.msra.mxu0 %v2841_v2 }
 0xb2a   : > { %1335 = vadd.xlane.f32.xlu0 %v1334_v6  ;;  %2821 = vmatpush3.bf16.msra.mxu1 %v2820_v14 }
 0xb2b   : > { %2822 = vmatprep.subr.bf16.mxu1 %v3022_v3  ;;  %2709 = vmatprep.subr.mxu0 %v3024_v9 }
 0xb2e   : > { %2824 = vmatpush3.bf16.msra.mxu1 %v2823_v17 }
 0xb2f   : > { %2825 = vmatprep.subr.bf16.mxu1 %v3022_v3 }
 0xbb7   : > { %v1336_v7 = vpop.xlane.xlu0 %1335 }
 0xbb8   : > { %v1337_v8 = vmul.f32 0.03125, %v1336_v7 }
 0xbba   : > { %v1338_v10 = vsub.f32 %v3384_v5, %v1337_v8  ;;  %v2495_v8 = vld [vmem:[%s3672_s6 + $0x1] ss:$0 sm:$0xff] }
 0xbbc   : > { %v1339_v11 = vmul.f32 %v1338_v10, %v1338_v10 }
 0xbbe   : > { %v1340_v12 = vsel %vm764_vm2, %v1339_v11, 0.0  ;;  %v2496_v11 = vld [vmem:[%s3673_s7 + $0x1] ss:$0 sm:$0xff] }
 0xbbf   : > { %1341 = vadd.xlane.f32.xlu1 %v1340_v12 }
 0xc4c   : > { %v1342_v18 = vpop.xlane.xlu1 %1341 }
 0xc4d   : > { %v1343_v19 = vmul.f32 0.03125, %v1342_v18 }
 0xc4f   : > { %v1344_v20 = vadd.f32 1e-05, %v1343_v19 }
 0xc51   : > { %2934 = vrsqrt.f32 %v1344_v20 }
 0xc5b   : > { %v2935_v21 = vpop.eup %2934 }
 0xc5c   : > { %v1346_v23 = vmul.f32 %v2935_v21, %v1338_v10 }
 0xc5e   : > { %v1353_v25 = vmul.f32 %v2486_v22, %v1346_v23 }
 0xc60   : > { %v1360_v26 = vadd.f32 %v2487_v24, %v1353_v25 }
 0xc62   : > { %2667 = vmatmul.mubr.msk.f32.vlgmr.msra.gmra.mrb[12].mxu1 %vm833_vm4, %v1360_v26 }
 0xc63   : > { %2685 = vmatprep.mubr.msk.f32.mxu1 %vm3023_vm3, %v3024_v9  ;;  %2827 = vmatpush3.bf16.msra.mxu1 %v2826_v29 }
 0xc64   : > { %2828 = vmatprep.subr.bf16.mxu1 %v3022_v3 }
 0xc67   : > { %2830 = vmatpush3.bf16.msra.mxu1 %v2829_v32 }
 0xc68   : > { %2831 = vmatprep.subr.bf16.mxu1 %v3022_v3 }
 0xc6b   : > { %2833 = vmatpush3.bf16.msra.mxu1 %v2832_v35 }
 0xc6c   : > { %2834 = vmatprep.subr.bf16.mxu1 %v3022_v3 }
 0xc6f   : > { %2836 = vmatpush3.bf16.msra.mxu1 %v2835_v38 }
 0xc70   : > { %2699 = vmatprep.subr.mxu1 %v3024_v9 }
 0xd35   : > { %v1441_v40 = vpop.f32.mrb[12].mxu1 }
 0xd36   : > { %v1442_v41 = vadd.f32 %v2488_v39, %v1441_v40  ;;  %v2668_v42 = vpop.f32.mrb[13].mxu1 }
 0xd38   : > { %v2490_v43 = vmul.f32 -1.702, %v1442_v41 }
 0xd3a   : > { %v1447_v44 = vmul.f32 1.442695, %v2490_v43 }
 0xd3c   : > { %2936 = vpow2.f32 %v1447_v44  ;;  %v2512_v44 = vld [vmem:[%s3676_s10 + $0x20] sm:$0xff] }
 0xd46   : > { %v2937_v45 = vpop.eup %2936 }
 0xd47   : > { %v1449_v46 = vadd.f32 1.0, %v2937_v45  ;;  %v2513_v45 = vld [vmem:[%s3676_s10 + $0x28] sm:$0xff] }
 0xd49   : > { %2938 = vrcp.f32 %v1449_v46  ;;  %v2514_v46 = vld [vmem:[%s3676_s10 + $0x30] sm:$0xff] }
 0xd53   : > { %v2939_v47 = vpop.eup %2938 }
 0xd54   : > { %v1452_v48 = vmul.f32 %v2939_v47, %v1442_v41  ;;  %v2844_v47 = vpack.c.bf16 %v2513_v45, %v2512_v44 }
 0xd56   : > { %2686 = vmatmul.mubr.msk.f32.vlgmr.msra.gmra.mrb[14].mxu1 %vm681_vm0, %v1452_v48  ;;  %v2515_v48 = vld [vmem:[%s3676_s10 + $0x38] sm:$0xff] }
 0xd57   : > { %2701 = vmatprep.mubr.msk.f32.mxu1 %vm3023_vm3, %v3024_v9 }
 0xe29   : > { %v1537_v50 = vpop.f32.mrb[14].mxu1 }
 0xe2a   : > { %v1538_v51 = vadd.f32 %v2491_v49, %v1537_v50  ;;  %v2687_v52 = vpop.f32.mrb[15].mxu1  ;;  %v2847_v49 = vpack.c.bf16 %v2515_v48, %v2514_v46 }
 0xe2c   : > { %v3451_v53 = vadd.f32 %v1538_v51, %v3384_v5 }
 0xe2e   : > { %v1546_v54 = vsel %vm764_vm2, %v3451_v53, 0.0 }
 0xe2f   : > { %1547 = vadd.xlane.f32.xlu0 %v1546_v54 }
 0xebc   : > { %v1548_v55 = vpop.xlane.xlu0 %1547 }
 0xebd   : > { %v1549_v56 = vmul.f32 0.03125, %v1548_v55 }
 0xebf   : > { %v1550_v57 = vsub.f32 %v3451_v53, %v1549_v56 }
 0xec1   : > { %v1551_v58 = vmul.f32 %v1550_v57, %v1550_v57 }
 0xec3   : > { %v1552_v59 = vsel %vm764_vm2, %v1551_v58, 0.0 }
 0xec4   : > { %1553 = vadd.xlane.f32.xlu0 %v1552_v59 }
 0xf51   : > { %v1554_v4 = vpop.xlane.xlu0 %1553 }
 0xf52   : > { %v1555_v5 = vmul.f32 0.03125, %v1554_v4 }
 0xf54   : > { %v1556_v6 = vadd.f32 1e-05, %v1555_v5 }
 0xf56   : > { %2940 = vrsqrt.f32 %v1556_v6  ;;  %v2523_v6 = vld [vmem:[%s3680_s14 + $0x20] sm:$0xff] }
 0xf60   : > { %v2941_v7 = vpop.eup %2940 }
 0xf61   : > { %v1558_v10 = vmul.f32 %v2941_v7, %v1550_v57  ;;  %v2517_v57 = vld [vmem:[%s3677_s11 + $0x1] ss:$0 sm:$0xff] }
 0xf63   : > { %v1565_v12 = vmul.f32 %v2495_v8, %v1558_v10  ;;  %v2525_v8 = vld [vmem:[%s3680_s14 + $0x30] sm:$0xff]  ;;  %v2526_v10 = vld [vmem:[%s3680_s14 + $0x38] sm:$0xff] }
 0xf65   : > { %v1572_v13 = vadd.f32 %v2496_v11, %v1565_v12  ;;  %v2853_v11 = vpack.c.bf16 %v2526_v10, %v2525_v8 }
 0xf67   : > { %2697 = vmatmul.mubr.msk.f32.vlgmr.msra.gmra.mrb[2].mxu0 %vm833_vm4, %v1572_v13 }
 0xf68   : > { %2711 = vmatprep.mubr.msk.f32.mxu0 %vm3023_vm3, %v3024_v9 }
0x103a   : > { %v1655_v14 = vpop.f32.mrb[2].mxu0 }
0x103b   : > { %v1656_v15 = vadd.f32 %v2502_v60, %v1655_v14  ;;  %v2698_v16 = vpop.f32.mrb[3].mxu0 }
0x103d   : > { %1826 = vrot.lane.b32.xlu1 %v1656_v15, %s3026_s30  ;;  %1660 = vrot.lane.b32.xlu0 %v1656_v15, %s3025_s28 }
0x1041   : > { %1824 = vrot.lane.b32.xlu1 %v1656_v15, %s3028_s4 }
0x10af   : > { %v1827_v17 = vpop.permute.xlu1 %1826  ;;  %v1661_v18 = vpop.permute.xlu0 %1660 }
0x10b0   : > { %2700 = vmatpush3.xpose.msk.msra.mxu1 %vm910_vm5, %v1661_v18  ;;  %2710 = vmatpush3.xpose.msk.msra.mxu0 %vm910_vm5, %v1827_v17  ;;  %v2522_v17 = vld [vmem:[%s3679_s13 + $0x1] ss:$0 sm:$0xff] }
0x10b1   : > { %2704 = vmatprep.subr.mxu1 %v3024_v9  ;;  %2843 = vmatprep.subr.bf16.mxu0 %v3022_v3 }
0x10b3   : > { %v1825_v19 = vpop.permute.xlu1 %1824  ;;  %2702 = vmatmul.mubr.msk.f32.vlgmr.msra.gmra.mrb[16].mxu1 %vm910_vm5, %v1656_v15 }
0x10b4   : > { %2712 = vmatmul.mubr.msk.f32.vlgmr.msra.gmra.mrb[4].mxu0 %vm910_vm5, %v1825_v19  ;;  %2706 = vmatprep.mubr.msk.f32.mxu1 %vm3023_vm3, %v3024_v9 }
0x10b5   : > { %2727 = vmatprep.mubr.msk.f32.mxu0 %vm3023_vm3, %v3024_v9  ;;  %2845 = vmatpush3.bf16.msra.mxu0 %v2844_v47 }
0x10b6   : > { %2846 = vmatprep.subr.bf16.mxu0 %v3022_v3 }
0x10b9   : > { %2848 = vmatpush3.bf16.msra.mxu0 %v2847_v49 }
0x10ba   : > { %2855 = vmatprep.subr.bf16.mxu0 %v3022_v3 }
0x1186   : > { %v1732_v20 = vpop.f32.mrb[16].mxu1 }
0x1187   : > { %v2703_v21 = vpop.f32.mrb[17].mxu1  ;;  %v1898_v22 = vpop.f32.mrb[4].mxu0  ;;  %v1736_v23 = vsel %vm985_vm6, %v1732_v20, -inf }
0x1188   : > { %1737 = vmax.xlane.f32.xlu1 %v1736_v23  ;;  %v2713_v24 = vpop.f32.mrb[5].mxu0  ;;  %v1902_v25 = vsel %vm985_vm6, %v1898_v22, -inf  ;;  %v2532_v21 = vld [vmem:[%s3682_s16 + $0x48] sm:$0xff]  ;;  %v2533_v23 = vld [vmem:[%s3682_s16 + $0x50] sm:$0xff] }
0x1189   : > { %1903 = vmax.xlane.f32.xlu0 %v1902_v25  ;;  %v2535_v25 = vld [vmem:[%s3682_s16 + $0x60] sm:$0xff] }
0x1199   : > { %1747 = vrot.lane.b32.xlu1 %v1656_v15, %s3027_s0  ;;  %s2962_s0 = sshll.u32 %s3031_s3, 4  ;;  %s2963_s0 = int_to_ptr.vmem [resolvable:$false] %s2962_s0 }
0x1215   : > { %v1738_v26 = vpop.xlane.xlu1 %1737 }
0x1216   : > { %v1739_v27 = vsub.f32 %v1732_v20, %v1738_v26  ;;  %v1904_v28 = vpop.xlane.xlu0 %1903  ;;  %v2531_v20 = vld [vmem:[%s3682_s16 + $0x40] sm:$0xff]  ;;  %v2536_v26 = vld [vmem:[%s3682_s16 + $0x68] sm:$0xff] }
0x1217   : > { %v1905_v29 = vsub.f32 %v1898_v22, %v1904_v28  ;;  %v2856_v22 = vpack.c.bf16 %v2532_v21, %v2531_v20  ;;  %v2537_v28 = vld [vmem:[%s3682_s16 + $0x70] sm:$0xff] }
0x1218   : > { %v1740_v30 = vmul.f32 1.442695, %v1739_v27  ;;  %v2862_v27 = vpack.c.bf16 %v2536_v26, %v2535_v25 }
0x1219   : > { %v1906_v31 = vmul.f32 1.442695, %v1905_v29  ;;  %v1748_v32 = vpop.permute.xlu1 %1747  ;;  %v2538_v29 = vld [vmem:[%s3682_s16 + $0x78] sm:$0xff] }
0x121a   : > { %2942 = vpow2.f32 %v1740_v30  ;;  %2705 = vmatpush3.msk.msra.mxu1 %vm1003_vm7, %v1748_v32  ;;  %v2865_v30 = vpack.c.bf16 %v2538_v29, %v2537_v28 }
0x121b   : > { %2714 = vmatprep.subr.mxu1 %v3024_v9  ;;  %2944 = vpow2.f32 %v1906_v31  ;;  %v2528_v31 = vld [vmem:[%s3681_s15 + $0x1] ss:$0 sm:$0xff] }
0x1224   : > { %v2943_v33 = vpop.eup %2942 }
0x1225   : > { %v1742_v34 = vsel %vm985_vm6, %v2943_v33, 0.0  ;;  %v2945_v35 = vpop.eup %2944 }
0x1226   : > { %1743 = vadd.xlane.f32.xlu0 %v1742_v34  ;;  %v1908_v36 = vsel %vm985_vm6, %v2945_v35, 0.0 }
0x122a   : > { %1909 = vadd.xlane.f32.xlu0 %v1908_v36 }
0x1240   : > { %1913 = vrot.lane.b32.xlu0 %v1656_v15, %s3029_s26  ;;  %v2521_v15 = vld [vmem:[%s3678_s12 + $0x1] ss:$0 sm:$0xff]  ;;  %s647_s26 = sand.u32 1, %s3012_s25  }
0x1241   : > { %s648_s2 = scalar_lea.vmem [#allocation2], %s647_s26  ;;  %s2396_s28 = scalar_lea.sflag [#allocation3], %s647_s26 }
0x1242   : > { %s2408_s22 = sshll.u32 %s648_s2, 4  ;;  %s3626_s22 = int_to_ptr.vmem [resolvable:$true] %s2408_s22 }
0x1243   : > { %s2958_s30 = scalar_lea.vmem %s3626_s22, 16  ;;  %p2965_p0 = scmp.lt.s32.totalorder %s3626_s22, %s2963_s0 }
0x1244   : > { %p2959_p11 = scmp.ne.s32.totalorder %s3626_s22, %s2958_s30 }
0x1246   : > { %p2960_p12 = pnand %p2959_p11, %p3180_p5 }
0x1248   : > { %p2961_p13 = pneg %p2960_p12 }
0x12b3   : > { %v1744_v37 = vpop.xlane.xlu0 %1743 }
0x12b4   : > { %2946 = vrcp.f32 %v1744_v37 }
0x12b7   : > { %v1910_v38 = vpop.xlane.xlu0 %1909 }
0x12b8   : > { %2948 = vrcp.f32 %v1910_v38 }
0x12bb   : > { %v1914_v41 = vpop.permute.xlu0 %1913 }
0x12be   : > { %v2947_v39 = vpop.eup %2946 }
0x12bf   : > { %v1746_v40 = vmul.f32 %v2947_v39, %v2943_v33 }
0x12c1   : > { %2707 = vmatmul.mubr.msk.f32.vlgmr.msra.gmra.mrb[18].mxu1 %vm999_vm8, %v1746_v40 }
0x12c2   : > { %v2949_v42 = vpop.eup %2948  ;;  %2715 = vmatpush3.msk.msra.mxu1 %vm1003_vm7, %v1914_v41  ;;  %2716 = vmatprep.mubr.msk.f32.mxu1 %vm3023_vm3, %v3024_v9  ;;  %v2540_v41 = vld [vmem:[%s3683_s17 + $0x1] ss:$0 sm:$0xff] }
0x12c3   : > { %v1912_v43 = vmul.f32 %v2949_v42, %v2945_v35  ;;  %2849 = vmatprep.subr.bf16.mxu1 %v3022_v3 }
0x12c5   : > { %2717 = vmatmul.mubr.msk.f32.vlgmr.msra.gmra.mrb[20].mxu1 %vm999_vm8, %v1912_v43 }
0x12c6   : > { %2738 = vmatprep.mubr.msk.f32.mxu1 %vm3023_vm3, %v3024_v9 }
0x1394   : > { %v1820_v50 = vpop.f32.mrb[18].mxu1 }
0x1395   : > { %v2708_v51 = vpop.f32.mrb[19].mxu1 }
0x1398   : > { %v1986_v52 = vpop.f32.mrb[20].mxu1 }
0x1399   : > { %1991 = vrot.lane.b32.xlu1 %v1986_v52, %s3721_s23  ;;  %v2718_v54 = vpop.f32.mrb[21].mxu1  ;;  %v2316_v52 = vld [vmem:[%s3686_s20] sm:$0xff]  ;;  %s2964_s23 = scalar_lea.vmem %s2963_s0, 32 }
0x139a   : > { %v2317_v54 = vld [vmem:[%s3686_s20 + $0x8] sm:$0xff]  ;;  %p2966_p1 = scmp.lt.s32.totalorder %s2964_s23, %s2958_s30 }
0x139c   : > { %p2967_p2 = por %p2966_p1, %p2965_p0 }
0x139e   : > { %p2968_p3 = pnand %p2967_p2, %p2961_p13 }
0x140b   : > { %v1992_v55 = vpop.permute.xlu1 %1991 }
0x140c   : > { %v1994_v56 = vsel %vm910_vm5, %v1820_v50, %v1992_v55  ;;  %v2868_v55 = vpack.c.bf16 %v2317_v54, %v2316_v52 }
0x140d   : > { %2728 = vmatmul.mubr.msk.f32.vlgmr.msra.gmra.mrb[6].mxu0 %vm833_vm4, %v1994_v56  ;;  %v2318_v56 = vld [vmem:[%s3686_s20 + $0x10] sm:$0xff] }
0x140e   : > { %2757 = vmatprep.mubr.msk.f32.mxu0 %vm3023_vm3, %v3024_v9  ;;  %2857 = vmatpush3.bf16.msra.mxu0 %v2856_v22 }
0x140f   : > { %2858 = vmatprep.subr.bf16.mxu0 %v3022_v3 }
0x14e0   : > { %v2077_v58 = vpop.f32.mrb[6].mxu0 }
0x14e1   : > { %v2078_v59 = vadd.f32 %v2517_v57, %v2077_v58  ;;  %v2729_v61 = vpop.f32.mrb[7].mxu0  ;;  %v2319_v57 = vld [vmem:[%s3686_s20 + $0x18] sm:$0xff] }
0x14e2   : > { %v2871_v58 = vpack.c.bf16 %v2319_v57, %v2318_v56 }
0x14e3   : > { %v3535_v62 = vadd.f32 %v2078_v59, %v3451_v53  ;;  %v2524_v53 = vld [vmem:[%s3680_s14 + $0x28] sm:$0xff] }
0x14e4   : > { %v2850_v7 = vpack.c.bf16 %v2524_v53, %v2523_v6 }
0x14e5   : > { %v2086_v63 = vsel %vm764_vm2, %v3535_v62, 0.0 }
0x14e6   : > { %2087 = vadd.xlane.f32.xlu1 %v2086_v63  ;;  %2851 = vmatpush3.bf16.msra.mxu1 %v2850_v7 }
0x14e7   : > { %2852 = vmatprep.subr.bf16.mxu1 %v3022_v3 }
0x14ea   : > { %2854 = vmatpush3.bf16.msra.mxu1 %v2853_v11 }
0x14eb   : > { %2867 = vmatprep.subr.bf16.mxu1 %v3022_v3 }
0x1573   : > { %v2088_v0 = vpop.xlane.xlu1 %2087 }
0x1574   : > { %v2089_v1 = vmul.f32 0.03125, %v2088_v0 }
0x1576   : > { %v2090_v2 = vsub.f32 %v3535_v62, %v2089_v1  ;;  %v2299_v1 = vld [vmem:[%s3685_s19] sm:$0x1] }
0x1578   : > { %v2091_v4 = vmul.f32 %v2090_v2, %v2090_v2 }
0x157a   : > { %v2092_v5 = vsel %vm764_vm2, %v2091_v4, 0.0 }
0x157b   : > { %2093 = vadd.xlane.f32.xlu0 %v2092_v5 }
0x1608   : > { %v2094_v12 = vpop.xlane.xlu0 %2093 }
0x1609   : > { %v2095_v13 = vmul.f32 0.03125, %v2094_v12 }
0x160b   : > { %v2096_v60 = vadd.f32 1e-05, %v2095_v13 }
0x160d   : > { %2950 = vrsqrt.f32 %v2096_v60 }
0x1617   : > { %v2951_v14 = vpop.eup %2950 }
0x1618   : > { %v2098_v16 = vmul.f32 %v2951_v14, %v2090_v2 }
0x161a   : > { %v2105_v18 = vmul.f32 %v2521_v15, %v2098_v16 }
0x161c   : > { %v2112_v19 = vadd.f32 %v2522_v17, %v2105_v18 }
0x161e   : > { %2739 = vmatmul.mubr.msk.f32.vlgmr.msra.gmra.mrb[22].mxu1 %vm833_vm4, %v2112_v19 }
0x161f   : > { %2768 = vmatprep.mubr.msk.f32.mxu1 %vm3023_vm3, %v3024_v9  ;;  %v2534_v9 = vld [vmem:[%s3682_s16 + $0x58] sm:$0xff]  ;;  %2869 = vmatpush3.bf16.msra.mxu1 %v2868_v55 }
0x1620   : > { %v2859_v24 = vpack.c.bf16 %v2534_v9, %v2533_v23  ;;  %2870 = vmatprep.subr.bf16.mxu1 %v3022_v3 }
0x1622   : > { %2860 = vmatpush3.bf16.msra.mxu0 %v2859_v24 }
0x1623   : > { %2861 = vmatprep.subr.bf16.mxu0 %v3022_v3  ;;  %2872 = vmatpush3.bf16.msra.mxu1 %v2871_v58 }
0x1626   : > { %2863 = vmatpush3.bf16.msra.mxu0 %v2862_v27 }
0x1627   : > { %2864 = vmatprep.subr.bf16.mxu0 %v3022_v3  ;;  %v2298_v3 = vld [vmem:[%s3684_s18] sm:$0x1] }
0x162a   : > { %2866 = vmatpush3.bf16.msra.mxu0 %v2865_v30 }
0x16f1   : > { %v2195_v32 = vpop.f32.mrb[22].mxu1 }
0x16f2   : > { %v2196_v33 = vadd.f32 %v2528_v31, %v2195_v32  ;;  %v2740_v34 = vpop.f32.mrb[23].mxu1 }
0x16f4   : > { %v2530_v35 = vmul.f32 -1.702, %v2196_v33 }
0x16f6   : > { %v2201_v36 = vmul.f32 1.442695, %v2530_v35 }
0x16f8   : > { %2952 = vpow2.f32 %v2201_v36 }
0x1702   : > { %v2953_v37 = vpop.eup %2952 }
0x1703   : > { %v2203_v38 = vadd.f32 1.0, %v2953_v37 }
0x1705   : > { %2954 = vrcp.f32 %v2203_v38 }
0x170f   : > { %v2955_v39 = vpop.eup %2954 }
0x1710   : > { %v2206_v40 = vmul.f32 %v2955_v39, %v2196_v33 }
0x1712   : > { %2758 = vmatmul.mubr.msk.f32.vlgmr.msra.gmra.mrb[8].mxu0 %vm681_vm0, %v2206_v40 }
0x17e5   : > { %v2293_v42 = vpop.f32.mrb[8].mxu0 }
0x17e6   : > { %v2294_v43 = vadd.f32 %v2540_v41, %v2293_v42  ;;  %v2759_v44 = vpop.f32.mrb[9].mxu0 }
0x17e8   : > { %v2297_v45 = vadd.f32 %v2294_v43, %v3535_v62 }
0x17ea   : > { %v2301_v46 = vsel %vm2300_vm9, %v2297_v45, 0.0 }
0x17eb   : > { %2302 = vadd.xlane.f32.xlu0 %v2301_v46 }
0x1878   : > { %v2303_v47 = vpop.xlane.xlu0 %2302 }
0x1879   : > { %v2304_v48 = vmul.f32 0.03125, %v2303_v47 }
0x187b   : > { %v2305_v49 = vsub.f32 %v2297_v45, %v2304_v48 }
0x187d   : > { %v2306_v50 = vmul.f32 %v2305_v49, %v2305_v49 }
0x187f   : > { %v2307_v51 = vsel %vm2300_vm9, %v2306_v50, 0.0 }
0x1880   : > { %2308 = vadd.xlane.f32.xlu1 %v2307_v51 }
0x190d   : > { %v2309_v59 = vpop.xlane.xlu1 %2308 }
0x190e   : > { %v2310_v61 = vmul.f32 0.03125, %v2309_v59 }
0x1910   : > { %v2311_v62 = vadd.f32 1e-05, %v2310_v61 }
0x1912   : > { %2956 = vrsqrt.f32 %v2311_v62 }
0x191c   : > { %v2957_v63 = vpop.eup %2956 }
0x191d   : > { %v2313_v0 = vmul.f32 %v2957_v63, %v2305_v49 }
0x191f   : > { %v2314_v2 = vmul.f32 %v2313_v0, %v2298_v3 }
0x1921   : > { %v2315_v4 = vadd.f32 %v2314_v2, %v2299_v1 }
0x1923   : > { %2769 = vmatmul.mubr.msk.f32.vlgmr.msra.gmra.mrb[24].mxu1 %vm833_vm4, %v2315_v4 }
0x19f6   : > { %v2389_v5 = vpop.f32.mrb[24].mxu1 }
0x19f7   : > { %2394 = vst.msk [vmem:[%s648_s2] sm:$0x1] %vm2393_vm10, %v2389_v5  ;;  %v2770_v6 = vpop.f32.mrb[25].mxu1 }
0x19f8   : > { %2971 = shalt.err (!%p2968_p3)
}
0x19f9   : > { %s2972_s26 = scalar_lea.hbm %s3624_s5, 16  ;;  %s2976_s21 = scalar_lea.hbm %s3724_s29, 32 }
0x19fa   : > { %p2973_p4 = scmp.ne.s32.totalorder %s3624_s5, %s2972_s26  ;;  %p2977_p9 = scmp.lt.u32.totalorder %s3624_s5, %s3724_s29 }
0x19fb   : > { %p2978_p10 = scmp.lt.u32.totalorder %s2976_s21, %s2972_s26  ;;  %p2980_p12 = scmp.lt.u32.totalorder %s2972_s26, %s3624_s5 }
0x19fc   : > { %p2974_p7 = pnand %p2973_p4, %p3180_p5 }
0x19fd   : > { %p2979_p11 = por %p2978_p10, %p2977_p9 }
0x19fe   : > { %p2975_p8 = pneg %p2974_p7 }
0x19ff   : > { %p2981_p13 = por %p2980_p12, %p2979_p11 }
0x1a01   : > { %p2982_p0 = pnand %p2981_p13, %p2975_p8 }
0x1a03   : > { %2985 = shalt.err (!%p2982_p0)
}
0x1a04   : > { %2873 = dma.vmem_to_hbm [thread:$0]  (%p3180_p5), %s3626_s22, 16, %s3624_s5, %s2396_s28  }
0x1a05 PF: > { %s3725_s30 = sld [smem:[#allocation7_spill]]  ;;  %s3726_s0 = sld [smem:[#allocation5_spill]] }
0x1a0b   : > { %p2879_p1 = scmp.ge.s32.totalorder %s3725_s30, 2  ;;  %s2420_s1 = sand.u32 1, %s3726_s0  }
0x1a0c   : > { %s2421_s2 = scalar_lea.sflag [#allocation3], %s2420_s1 }
0x1a0d   : > { %p2876_p2 = pnand %p2879_p1, %p3184_p6 }
0x1a0f   : > { %3003 = dma.done.wait (!%p2876_p2), %s2421_s2, 16  }
0x1a10   : > { %3005 = vsyncadd (!%p2876_p2), %s2421_s2, 4294967280  ;;  %s3728_s27 = sld [smem:[#allocation8_spill]]  ;;  %s3729_s26 = sld [smem:[#allocation6_spill]] }
0x1a11   : > { %s3730_s21 = sld [smem:[#allocation9_spill]]  ;;  %s3731_s2 = smov %s3012_s25 }
0x1a16   : > { %p31_p3 = scmp.ge.s32.totalorder %s3728_s27, 4   ;;  %s3732_s25 = smov %s3729_s26 }
0x1a17   : > { %s3733_s26 = smov %s3730_s21 }
0x1a18   :  { %33 = sbr.rel (!%p31_p3) target bundleno = 11 (0xb), region = 151 }
0x1a1f   :  { %2425 = vsyncpa [#allocation3], 1 }
0x1a20   :  { %2427 = vsyncpa [#allocation3 + $0x1], 1 }

</bundles_post_ra>
